<compile_context>
chip_gen: v5e
topology: v5e:2x2
jax: 0.10.0
libtpu: 0.0.40
codegen_flags: <defaults>
</compile_context>

<pallas_src>
import functools

import jax
import jax.numpy as jnp
from jax.experimental import pallas as pl
from jax.experimental.pallas import tpu as pltpu

DOT_DT = jnp.bfloat16   # MXU operand dtype (accumulation is always f32)
ACT_DT = jnp.bfloat16   # inter-kernel token-activation storage dtype


# ----------------------------------------------------------------------------
# small helpers
# ----------------------------------------------------------------------------
def _round_up(x, m):
    return ((x + m - 1) // m) * m


def _pick_tile(n, target):
    """Tile for a length-n dim: whole dim if small, else largest multiple-of-8
    divisor <= target (no padding), else pad to a multiple of `target`.
    Returns (tile, padded_n)."""
    if n <= target:
        return n, n
    best = 0
    for t in range(target, 7, -1):
        if n % t == 0 and t % 8 == 0:
            best = t
            break
    if best >= max(8, target // 4):
        return best, n
    return target, _round_up(n, target)


def _pad_axis(x, axis, new_size):
    if x.shape[axis] == new_size:
        return x
    pads = [(0, 0)] * x.ndim
    pads[axis] = (0, new_size - x.shape[axis])
    return jnp.pad(x, pads)


def _cparams(*sem):
    return pltpu.CompilerParams(dimension_semantics=sem,
                                vmem_limit_bytes=64 * 1024 * 1024)


def _gelu(x):
    # tanh-approx GELU: transcendental goes to the EUP slot instead of ~12 VALU ops.
    return 0.5 * x * (1.0 + jnp.tanh(0.7978845608028654 * (x + 0.044715 * x * x * x)))


def _softshrink(x, lam):
    return jnp.where(x > lam, x - lam, jnp.where(x < -lam, x + lam, 0.0))


# ----------------------------------------------------------------------------
# patch embed: x@W + b + pos_embed, one kernel, grid (B, HW/T)
# ----------------------------------------------------------------------------
def _patch_embed_kernel(x_ref, w_ref, b_ref, pos_ref, o_ref):
    y = jnp.dot(x_ref[0].astype(DOT_DT), w_ref[...],
                preferred_element_type=jnp.float32)
    o_ref[0] = (y + b_ref[...] + pos_ref[0]).astype(o_ref.dtype)


def patch_embed_pallas(xp, w, b_row, pos, target=512):
    B, HW, K = xp.shape
    C = w.shape[1]
    T, HWp = _pick_tile(HW, target)
    xq = _pad_axis(xp, 1, HWp)
    pq = _pad_axis(pos, 1, HWp)
    out = pl.pallas_call(
        _patch_embed_kernel,
        out_shape=jax.ShapeDtypeStruct((B, HWp, C), ACT_DT),
        grid=(B, HWp // T),
        in_specs=[pl.BlockSpec((1, T, K), lambda bi, ti: (bi, ti, 0)),
                  pl.BlockSpec((K, C), lambda bi, ti: (0, 0)),
                  pl.BlockSpec((1, C), lambda bi, ti: (0, 0)),
                  pl.BlockSpec((1, T, C), lambda bi, ti: (0, ti, 0))],
        out_specs=pl.BlockSpec((1, T, C), lambda bi, ti: (bi, ti, 0)),
        compiler_params=_cparams("parallel", "parallel"),
    )(xq, w, b_row, pq)
    return out[:, :HW] if HWp != HW else out


# ----------------------------------------------------------------------------
# InstanceNorm2d (affine, eps=1e-6): tiled per-(batch,channel) stats; the
# scale/shift application is either a standalone kernel (norm1, f32 for FFT)
# or fused into the MLP kernel (norm2).
# ----------------------------------------------------------------------------
def _in_stats_kernel(x_ref, sum_ref, sq_ref):
    @pl.when(pl.program_id(1) == 0)
    def _():
        sum_ref[...] = jnp.zeros_like(sum_ref)
        sq_ref[...] = jnp.zeros_like(sq_ref)
    x = x_ref[0].astype(jnp.float32)
    sum_ref[0] += jnp.sum(x, axis=0, keepdims=True)
    sq_ref[0] += jnp.sum(x * x, axis=0, keepdims=True)


def instance_norm_scale_shift(x3, gamma, beta, eps=1e-6, target=1024):
    """x3: (B, HW, C). Returns per-(B,C) scale, shift rows of shape (B, 1, C)."""
    B, HW, C = x3.shape
    T, HWp = _pick_tile(HW, target)
    xq = _pad_axis(x3, 1, HWp)                 # zero rows add nothing to sum/sumsq
    sums, sqs = pl.pallas_call(
        _in_stats_kernel,
        out_shape=(jax.ShapeDtypeStruct((B, 1, C), jnp.float32),
                   jax.ShapeDtypeStruct((B, 1, C), jnp.float32)),
        grid=(B, HWp // T),
        in_specs=[pl.BlockSpec((1, T, C), lambda bi, ti: (bi, ti, 0))],
        out_specs=(pl.BlockSpec((1, 1, C), lambda bi, ti: (bi, 0, 0)),
                   pl.BlockSpec((1, 1, C), lambda bi, ti: (bi, 0, 0))),
        compiler_params=_cparams("parallel", "arbitrary"),
    )(xq)
    mean = sums / HW
    var = jnp.maximum(sqs / HW - mean * mean, 0.0)   # biased variance (PyTorch IN)
    rstd = jax.lax.rsqrt(var + eps)
    scale = gamma.reshape(1, 1, C).astype(jnp.float32) * rstd
    shift = beta.reshape(1, 1, C).astype(jnp.float32) - mean * scale
    return scale, shift


def _in_apply_kernel(x_ref, s_ref, t_ref, o_ref):
    o_ref[0] = (x_ref[0].astype(jnp.float32) * s_ref[0] + t_ref[0]).astype(o_ref.dtype)


def instance_norm_apply(x3, scale, shift, out_dtype=jnp.float32, target=1024):
    B, HW, C = x3.shape
    T, HWp = _pick_tile(HW, target)
    xq = _pad_axis(x3, 1, HWp)
    out = pl.pallas_call(
        _in_apply_kernel,
        out_shape=jax.ShapeDtypeStruct((B, HWp, C), out_dtype),
        grid=(B, HWp // T),
        in_specs=[pl.BlockSpec((1, T, C), lambda bi, ti: (bi, ti, 0)),
                  pl.BlockSpec((1, 1, C), lambda bi, ti: (bi, 0, 0)),
                  pl.BlockSpec((1, 1, C), lambda bi, ti: (bi, 0, 0))],
        out_specs=pl.BlockSpec((1, T, C), lambda bi, ti: (bi, ti, 0)),
        compiler_params=_cparams("parallel", "parallel"),
    )(xq, scale, shift)
    return out[:, :HW] if HWp != HW else out


# ----------------------------------------------------------------------------
# AFNO spectral MLP on [re|im] with block-diagonal complex-expanded weights.
# Real/imag are separate inputs/outputs (no HBM concat/split).
# ----------------------------------------------------------------------------
def _spectral_kernel(re_ref, im_ref, w1_ref, w2_ref, ro_ref, io_ref, *, lam):
    C = ro_ref.shape[-1]
    re = re_ref[...].astype(DOT_DT)
    im = im_ref[...].astype(DOT_DT)
    # W1 = [[Wr, Wi], [-Wi, Wr]]  ->  [re|im] @ W1, done as two dots (no concat)
    h = (jnp.dot(re, w1_ref[:C, :], preferred_element_type=jnp.float32) +
         jnp.dot(im, w1_ref[C:, :], preferred_element_type=jnp.float32))
    h = jnp.maximum(h, 0.0).astype(DOT_DT)            # ComplexReLU, cartesian
    yr = jnp.dot(h, w2_ref[:, :C], preferred_element_type=jnp.float32)
    yi = jnp.dot(h, w2_ref[:, C:], preferred_element_type=jnp.float32)
    ro_ref[...] = _softshrink(yr, lam)                 # F.softshrink on real view
    io_ref[...] = _softshrink(yi, lam)


def afno_filter_spectral(xn1_3, w1_big, w2_big, B, h, w, C, lam, target=256):
    """AFNO2D spectral part (hard_thresholding_fraction == 1, hidden_size_factor == 1).
    Takes norm1 output (B, HW, C) f32, returns irfft2 result (B, HW, C) f32.
    The trailing `+ b1 + bias` of the reference is folded into the skip epilogue."""
    # TODO(synk): hard_thresholding_fraction < 1.0 (mode truncation) not implemented.
    # TODO(synk): rfft2/irfft2 have no Pallas TPU equivalent; they run in plain JAX/XLA.
    xs = xn1_3.reshape(B, h, w, C).astype(jnp.float32)
    xf = jnp.fft.rfft2(xs, axes=(1, 2), norm="ortho")          # (B, h, wf, C) c64
    wf = w // 2 + 1
    M = B * h * wf
    re = jnp.real(xf).reshape(M, C)
    im = jnp.imag(xf).reshape(M, C)

    tm, Mp = _pick_tile(M, target)
    re = _pad_axis(re, 0, Mp)
    im = _pad_axis(im, 0, Mp)

    ro, io = pl.pallas_call(
        functools.partial(_spectral_kernel, lam=float(lam)),
        out_shape=(jax.ShapeDtypeStruct((Mp, C), jnp.float32),
                   jax.ShapeDtypeStruct((Mp, C), jnp.float32)),
        grid=(Mp // tm,),
        in_specs=[pl.BlockSpec((tm, C), lambda i: (i, 0)),
                  pl.BlockSpec((tm, C), lambda i: (i, 0)),
                  pl.BlockSpec((2 * C, 2 * C), lambda i: (0, 0)),   # weights resident
                  pl.BlockSpec((2 * C, 2 * C), lambda i: (0, 0))],
        out_specs=(pl.BlockSpec((tm, C), lambda i: (i, 0)),
                   pl.BlockSpec((tm, C), lambda i: (i, 0))),
        compiler_params=_cparams("parallel"),
    )(re, im, w1_big, w2_big)
    if Mp != M:
        ro, io = ro[:M], io[:M]

    yc = jax.lax.complex(ro, io).reshape(B, h, wf, C)
    y = jnp.fft.irfft2(yc, s=(h, w), axes=(1, 2), norm="ortho")   # (B, h, w, C)
    return y.reshape(B, h * w, C)


# ----------------------------------------------------------------------------
# FNO skip conv with fused epilogue:
#   out = residual @ W_skip + (skip_b + b1) + irfft_out + norm1_out
# ----------------------------------------------------------------------------
def _skip_fuse_kernel(x_ref, w_ref, b_ref, spec_ref, xn_ref, o_ref):
    y = jnp.dot(x_ref[0].astype(DOT_DT), w_ref[...],
                preferred_element_type=jnp.float32)
    o_ref[0] = (y + b_ref[...] + spec_ref[0] + xn_ref[0]).astype(o_ref.dtype)


def skip_fno_fused(residual3, skip_w, bias_row, y_spec3, xn1_3, target=512):
    B, HW, C = residual3.shape
    T, HWp = _pick_tile(HW, target)
    r = _pad_axis(residual3, 1, HWp)
    s = _pad_axis(y_spec3, 1, HWp)
    n = _pad_axis(xn1_3, 1, HWp)
    out = pl.pallas_call(
        _skip_fuse_kernel,
        out_shape=jax.ShapeDtypeStruct((B, HWp, C), ACT_DT),
        grid=(B, HWp // T),
        in_specs=[pl.BlockSpec((1, T, C), lambda bi, ti: (bi, ti, 0)),
                  pl.BlockSpec((C, C), lambda bi, ti: (0, 0)),
                  pl.BlockSpec((1, C), lambda bi, ti: (0, 0)),
                  pl.BlockSpec((1, T, C), lambda bi, ti: (bi, ti, 0)),
                  pl.BlockSpec((1, T, C), lambda bi, ti: (bi, ti, 0))],
        out_specs=pl.BlockSpec((1, T, C), lambda bi, ti: (bi, ti, 0)),
        compiler_params=_cparams("parallel", "parallel"),
    )(r, skip_w, bias_row, s, n)
    return out[:, :HW] if HWp != HW else out


# ----------------------------------------------------------------------------
# fused norm2 + MLP: x*scale+shift -> fc1 -> GELU -> fc2 -> + residual
# ----------------------------------------------------------------------------
def _in_mlp_kernel(x_ref, s_ref, t_ref, w1_ref, b1_ref, w2_ref, b2_ref, r_ref, o_ref):
    xn = x_ref[0].astype(jnp.float32) * s_ref[0] + t_ref[0]        # norm2 prologue
    h = jnp.dot(xn.astype(DOT_DT), w1_ref[...],
                preferred_element_type=jnp.float32) + b1_ref[...]
    h = _gelu(h)
    y = jnp.dot(h.astype(DOT_DT), w2_ref[...],
                preferred_element_type=jnp.float32) + b2_ref[...]
    o_ref[0] = (y + r_ref[0].astype(jnp.float32)).astype(o_ref.dtype)


def in_mlp_fused(x3, scale, shift, w1, b1_row, w2, b2_row, residual3, target=256):
    B, HW, C = x3.shape
    Hd = w1.shape[1]
    T, HWp = _pick_tile(HW, target)
    xq = _pad_axis(x3, 1, HWp)
    rq = _pad_axis(residual3, 1, HWp)
    out = pl.pallas_call(
        _in_mlp_kernel,
        out_shape=jax.ShapeDtypeStruct((B, HWp, C), ACT_DT),
        grid=(B, HWp // T),
        in_specs=[pl.BlockSpec((1, T, C), lambda bi, ti: (bi, ti, 0)),
                  pl.BlockSpec((1, 1, C), lambda bi, ti: (bi, 0, 0)),
                  pl.BlockSpec((1, 1, C), lambda bi, ti: (bi, 0, 0)),
                  pl.BlockSpec((C, Hd), lambda bi, ti: (0, 0)),     # weights resident
                  pl.BlockSpec((1, Hd), lambda bi, ti: (0, 0)),
                  pl.BlockSpec((Hd, C), lambda bi, ti: (0, 0)),
                  pl.BlockSpec((1, C), lambda bi, ti: (0, 0)),
                  pl.BlockSpec((1, T, C), lambda bi, ti: (bi, ti, 0))],
        out_specs=pl.BlockSpec((1, T, C), lambda bi, ti: (bi, ti, 0)),
        compiler_params=_cparams("parallel", "parallel"),
    )(xq, scale, shift, w1, b1_row, w2, b2_row, rq)
    return out[:, :HW] if HWp != HW else out


# ----------------------------------------------------------------------------
# head: bias-less 1x1 conv
# ----------------------------------------------------------------------------
def _head_kernel(x_ref, w_ref, o_ref):
    o_ref[0] = jnp.dot(x_ref[0].astype(DOT_DT), w_ref[...],
                       preferred_element_type=jnp.float32)


def head_pallas(x3, w, target=512):
    B, HW, C = x3.shape
    N = w.shape[1]
    T, HWp = _pick_tile(HW, target)
    xq = _pad_axis(x3, 1, HWp)
    out = pl.pallas_call(
        _head_kernel,
        out_shape=jax.ShapeDtypeStruct((B, HWp, N), jnp.float32),
        grid=(B, HWp // T),
        in_specs=[pl.BlockSpec((1, T, C), lambda bi, ti: (bi, ti, 0)),
                  pl.BlockSpec((C, N), lambda bi, ti: (0, 0))],
        out_specs=pl.BlockSpec((1, T, N), lambda bi, ti: (bi, ti, 0)),
        compiler_params=_cparams("parallel", "parallel"),
    )(xq, w)
    return out[:, :HW] if HWp != HW else out


# ----------------------------------------------------------------------------
# block / full model forward (token-major (B, HW, C) activations, bf16 trunk)
# ----------------------------------------------------------------------------
def block_forward(tok, bp, B, h, w, C, lam):
    residual = tok                                                   # (B, HW, C) bf16
    s1, t1 = instance_norm_scale_shift(tok, bp["norm1_w"], bp["norm1_b"])
    xn1 = instance_norm_apply(tok, s1, t1, out_dtype=jnp.float32)    # f32: FFT input + filter bias
    y_spec = afno_filter_spectral(xn1, bp["w1_big"], bp["w2_big"], B, h, w, C, lam)
    # filter(norm1(x)) + Conv1x1(residual); (irfft + b1 + xn1) fused into the epilogue
    x = skip_fno_fused(residual, bp["skip_w"], bp["skip_bias_row"], y_spec, xn1)
    s2, t2 = instance_norm_scale_shift(x, bp["norm2_w"], bp["norm2_b"])
    # norm2 apply + fc1 -> GELU -> fc2 -> + pre-block residual (nested_skip_fno=True)
    x = in_mlp_fused(x, s2, t2, bp["fc1_w"], bp["fc1_b"], bp["fc2_w"], bp["fc2_b"],
                     residual)
    return x


def afnonet_forward(x, params, cfg):
    B, Cin, _, _ = x.shape
    p0, p1 = cfg["patch_size"]
    h, w = cfg["h"], cfg["w"]
    C = cfg["embed_dim"]
    oc = cfg["out_chans"]
    HW = h * w

    # patch extraction: non-overlapping (Cin, p0, p1) patches -> (B, HW, K)
    xp = (x.reshape(B, Cin, h, p0, w, p1)
           .transpose(0, 2, 4, 1, 3, 5)
           .reshape(B, HW, Cin * p0 * p1))
    tok = patch_embed_pallas(xp, params["patch_w"], params["patch_b"],
                             params["pos_embed"])                     # (B, HW, C) bf16

    for bp in params["blocks"]:
        tok = block_forward(tok, bp, B, h, w, C, cfg["sparsity_threshold"])

    y = head_pallas(tok, params["head_w"])                            # (B, HW, oc*p0*p1) f32

    # un-patchify: channel dim = (p0, p1, oc); matches torch permute(0,3,4,1,5,2)
    y = (y.reshape(B, h, w, p0, p1, oc)
          .transpose(0, 5, 1, 3, 2, 4)
          .reshape(B, oc, h * p0, w * p1))
    return y


# ----------------------------------------------------------------------------
# parameter init (PyTorch layouts) + one-time prep into kernel-friendly layouts
# ----------------------------------------------------------------------------
def init_params(key, cfg):
    def nrm(k, shape, std=0.02):
        return std * jax.random.normal(k, shape, jnp.float32)

    keys = iter(jax.random.split(key, 256))
    C = cfg["embed_dim"]
    p0, p1 = cfg["patch_size"]
    nb = cfg["num_blocks"]
    bs = C // nb
    hid = int(C * cfg["mlp_ratio"])

    params = {
        "patch_w": nrm(next(keys), (C, cfg["inp_chans"], p0, p1)),
        "patch_b": jnp.zeros((C,), jnp.float32),
        "pos_embed": nrm(next(keys), (1, C, cfg["h"] * cfg["w"])),
        "head_w": nrm(next(keys), (cfg["out_chans"] * p0 * p1, C)),
        "blocks": [],
    }
    for _ in range(cfg["num_layers"]):
        params["blocks"].append({
            "norm1_w": jnp.ones((C,), jnp.float32),
            "norm1_b": jnp.zeros((C,), jnp.float32),
            "w1": nrm(next(keys), (nb, bs, bs, 2)),
            "b1": nrm(next(keys), (1, C, 1, 1)),
            "w2": nrm(next(keys), (nb, bs, bs, 2)),
            "skip_w": nrm(next(keys), (C, C)),
            "skip_b": jnp.zeros((C,), jnp.float32),
            "norm2_w": jnp.ones((C,), jnp.float32),
            "norm2_b": jnp.zeros((C,), jnp.float32),
            "fc1_w": nrm(next(keys), (hid, C)),
            "fc1_b": jnp.zeros((hid,), jnp.float32),
            "fc2_w": nrm(next(keys), (C, hid)),
            "fc2_b": jnp.zeros((C,), jnp.float32),
        })
    return params


def prepare_params(raw, cfg, dot_dtype=DOT_DT):
    """Pre-transpose weights, pre-cast MXU operands to bf16, fold skip_b + b1 into
    one bias row, and build block-diagonal complex-expanded spectral weights."""
    C = cfg["embed_dim"]
    nb = cfg["num_blocks"]
    hid = int(C * cfg["mlp_ratio"])
    eye = jnp.eye(nb, dtype=jnp.float32)

    def block_diag(wk):              # (nb, r, c) -> (nb*r, nb*c) block diagonal
        nbk, r, c = wk.shape
        return jnp.einsum("krc,kl->krlc", wk, eye).reshape(nbk * r, nbk * c)

    prm = {
        "patch_w": raw["patch_w"].reshape(C, -1).T.astype(dot_dtype),
        "patch_b": raw["patch_b"].reshape(1, C).astype(jnp.float32),
        "pos_embed": raw["pos_embed"].transpose(0, 2, 1).astype(jnp.float32),  # (1, HW, C)
        "head_w": raw["head_w"].T.astype(dot_dtype),
        "blocks": [],
    }
    for b in raw["blocks"]:
        w1r, w1i = b["w1"][..., 0], b["w1"][..., 1]
        w2r, w2i = b["w2"][..., 0], b["w2"][..., 1]
        W1 = jnp.concatenate(
            [jnp.concatenate([block_diag(w1r), block_diag(w1i)], axis=1),
             jnp.concatenate([-block_diag(w1i), block_diag(w1r)], axis=1)], axis=0)
        W2 = jnp.concatenate(
            [jnp.concatenate([block_diag(w2r), block_diag(w2i)], axis=1),
             jnp.concatenate([-block_diag(w2i), block_diag(w2r)], axis=1)], axis=0)
        prm["blocks"].append({
            "norm1_w": b["norm1_w"].astype(jnp.float32),
            "norm1_b": b["norm1_b"].astype(jnp.float32),
            "norm2_w": b["norm2_w"].astype(jnp.float32),
            "norm2_b": b["norm2_b"].astype(jnp.float32),
            "w1_big": W1.astype(dot_dtype),
            "w2_big": W2.astype(dot_dtype),
            "skip_w": b["skip_w"].T.astype(dot_dtype),
            # skip-conv bias and AFNO's post-iFFT b1 folded into one row
            "skip_bias_row": (b["skip_b"].reshape(1, C)
                              + b["b1"].reshape(1, C)).astype(jnp.float32),
            "fc1_w": b["fc1_w"].T.astype(dot_dtype),
            "fc1_b": b["fc1_b"].reshape(1, hid).astype(jnp.float32),
            "fc2_w": b["fc2_w"].T.astype(dot_dtype),
            "fc2_b": b["fc2_b"].reshape(1, C).astype(jnp.float32),
        })
    return prm


if __name__ == "__main__":
    cfg = dict(
        inp_shape=(24, 24),
        patch_size=(6, 6),
        inp_chans=2,
        out_chans=2,
        embed_dim=128,          # lane-dense channel width (multiple of 128)
        num_layers=2,
        mlp_ratio=4.0,
        num_blocks=8,
        sparsity_threshold=0.01,
    )
    cfg["h"] = cfg["inp_shape"][0] // cfg["patch_size"][0]   # 4
    cfg["w"] = cfg["inp_shape"][1] // cfg["patch_size"][1]   # 4

    key = jax.random.PRNGKey(0)
    raw_params = init_params(key, cfg)
    params = prepare_params(raw_params, cfg)

    x = jax.random.normal(jax.random.fold_in(key, 1234),
                          (2, cfg["inp_chans"], *cfg["inp_shape"]), jnp.float32)

    fwd = jax.jit(lambda inp, prm: afnonet_forward(inp, prm, cfg))
    y = fwd(x, params)
    jax.block_until_ready(y)
    assert y.shape == (2, cfg["out_chans"], cfg["inp_shape"][0], cfg["inp_shape"][1])
    assert y.dtype == jnp.float32
    print("KERNEL_OK")
</pallas_src>

<mosaic_0001>
module attributes {stable_mosaic.version = 11 : i64} {
  func.func @_patch_embed_kernel(%arg0: i32, %arg1: i32, %arg2: memref<1x16x72xf32, #tpu.memory_space<vmem>>, %arg3: memref<72x128xbf16, #tpu.memory_space<vmem>>, %arg4: memref<1x128xf32, #tpu.memory_space<vmem>>, %arg5: memref<1x16x128xf32, #tpu.memory_space<vmem>>, %arg6: memref<1x16x128xbf16, #tpu.memory_space<vmem>>) attributes {dimension_semantics = [#tpu.dimension_semantics<parallel>, #tpu.dimension_semantics<parallel>], iteration_bounds = array<i64: 2, 1>, scalar_prefetch = 0 : i64, scratch_operands = 0 : i64, tpu.core_type = #tpu.core_type<tc>, window_params = [{transform_indices = @transform_0, window_bounds = array<i64: 1, 16, 72>}, {pipeline_mode = #tpu.pipeline_mode<synchronous>, transform_indices = @transform_1, window_bounds = array<i64: 72, 128>}, {pipeline_mode = #tpu.pipeline_mode<synchronous>, transform_indices = @transform_2, window_bounds = array<i64: 1, 128>}, {transform_indices = @transform_3, window_bounds = array<i64: 1, 16, 128>}, {transform_indices = @transform_4, window_bounds = array<i64: 1, 16, 128>}]} {
    %c0 = arith.constant 0 : index
    %c0_0 = arith.constant 0 : index
    %c0_1 = arith.constant 0 : index
    %0 = vector.load %arg2[%c0, %c0_0, %c0_1] : memref<1x16x72xf32, #tpu.memory_space<vmem>>, vector<1x16x72xf32>
    %1 = vector.shape_cast %0 : vector<1x16x72xf32> to vector<16x72xf32>
    %2 = arith.truncf %1 : vector<16x72xf32> to vector<16x72xbf16>
    %c0_2 = arith.constant 0 : index
    %c0_3 = arith.constant 0 : index
    %3 = vector.load %arg3[%c0_2, %c0_3] : memref<72x128xbf16, #tpu.memory_space<vmem>>, vector<72x128xbf16>
    %cst = arith.constant dense<0.000000e+00> : vector<16x128xf32>
    %4 = tpu.matmul %2, %3, %cst {dimension_numbers = #tpu.dot_dimension_numbers<[1], [0], [0], [1], [0, 0, 1, 1], [], []>} : vector<16x72xbf16>, vector<72x128xbf16>, vector<16x128xf32> -> vector<16x128xf32>
    %c0_4 = arith.constant 0 : index
    %c0_5 = arith.constant 0 : index
    %5 = vector.load %arg4[%c0_4, %c0_5] : memref<1x128xf32, #tpu.memory_space<vmem>>, vector<1x128xf32>
    %6 = vector.broadcast %5 : vector<1x128xf32> to vector<16x128xf32>
    %7 = arith.addf %4, %6 : vector<16x128xf32>
    %c0_6 = arith.constant 0 : index
    %c0_7 = arith.constant 0 : index
    %c0_8 = arith.constant 0 : index
    %8 = vector.load %arg5[%c0_6, %c0_7, %c0_8] : memref<1x16x128xf32, #tpu.memory_space<vmem>>, vector<1x16x128xf32>
    %9 = vector.shape_cast %8 : vector<1x16x128xf32> to vector<16x128xf32>
    %10 = arith.addf %7, %9 : vector<16x128xf32>
    %11 = arith.truncf %10 : vector<16x128xf32> to vector<16x128xbf16>
    %c0_9 = arith.constant 0 : index
    %c0_10 = arith.constant 0 : index
    %c0_11 = arith.constant 0 : index
    %12 = vector.load %arg6[%c0_9, %c0_10, %c0_11] : memref<1x16x128xbf16, #tpu.memory_space<vmem>>, vector<1x16x128xbf16>
    %13 = vector.shape_cast %12 : vector<1x16x128xbf16> to vector<16x128xbf16>
    %14 = vector.shape_cast %11 : vector<16x128xbf16> to vector<1x16x128xbf16>
    tpu.vector_store %arg6[%c0_9, %c0_10, %c0_11], %14 {strides = array<i32>} : memref<1x16x128xbf16, #tpu.memory_space<vmem>>, vector<1x16x128xbf16>,
    return
  }
  func.func @transform_0(%arg0: i32, %arg1: i32) -> (i32, i32, i32) {
    %c0_i32 = arith.constant 0 : i32
    %c0_i32_0 = arith.constant 0 : i32
    return %arg0, %arg1, %c0_i32 : i32, i32, i32
  }
  func.func @transform_1(%arg0: i32, %arg1: i32) -> (i32, i32) {
    %c0_i32 = arith.constant 0 : i32
    %c0_i32_0 = arith.constant 0 : i32
    %c0_i32_1 = arith.constant 0 : i32
    return %c0_i32, %c0_i32_0 : i32, i32
  }
  func.func @transform_2(%arg0: i32, %arg1: i32) -> (i32, i32) {
    %c0_i32 = arith.constant 0 : i32
    %c0_i32_0 = arith.constant 0 : i32
    %c0_i32_1 = arith.constant 0 : i32
    return %c0_i32, %c0_i32_0 : i32, i32
  }
  func.func @transform_3(%arg0: i32, %arg1: i32) -> (i32, i32, i32) {
    %c0_i32 = arith.constant 0 : i32
    %c0_i32_0 = arith.constant 0 : i32
    %c0_i32_1 = arith.constant 0 : i32
    return %c0_i32, %arg1, %c0_i32_0 : i32, i32, i32
  }
  func.func @transform_4(%arg0: i32, %arg1: i32) -> (i32, i32, i32) {
    %c0_i32 = arith.constant 0 : i32
    %c0_i32_0 = arith.constant 0 : i32
    return %arg0, %arg1, %c0_i32 : i32, i32, i32
  }
}

module attributes {stable_mosaic.version = 11 : i64} {
  func.func @_in_stats_kernel(%arg0: i32, %arg1: i32, %arg2: memref<1x16x128xbf16, #tpu.memory_space<vmem>>, %arg3: memref<1x1x128xf32, #tpu.memory_space<vmem>>, %arg4: memref<1x1x128xf32, #tpu.memory_space<vmem>>) attributes {dimension_semantics = [#tpu.dimension_semantics<parallel>, #tpu.dimension_semantics<arbitrary>], iteration_bounds = array<i64: 2, 1>, scalar_prefetch = 0 : i64, scratch_operands = 0 : i64, tpu.core_type = #tpu.core_type<tc>, window_params = [{transform_indices = @transform_0, window_bounds = array<i64: 1, 16, 128>}, {transform_indices = @transform_1, window_bounds = array<i64: 1, 1, 128>}, {transform_indices = @transform_2, window_bounds = array<i64: 1, 1, 128>}]} {
    %c0_i32 = arith.constant 0 : i32
    %0 = arith.cmpi eq, %arg1, %c0_i32 : i32
    %1 = arith.extui %0 : i1 to i32
    %c0_i32_0 = arith.constant 0 : i32
    %2 = arith.cmpi ne, %1, %c0_i32_0 : i32
    scf.if %2 {
      %cst_16 = arith.constant 0.000000e+00 : f32
      %23 = vector.broadcast %cst_16 : f32 to vector<1x1x128xf32>
      %c0_17 = arith.constant 0 : index
      %c0_18 = arith.constant 0 : index
      %c0_19 = arith.constant 0 : index
      %24 = vector.load %arg3[%c0_17, %c0_18, %c0_19] : memref<1x1x128xf32, #tpu.memory_space<vmem>>, vector<1x1x128xf32>
      tpu.vector_store %arg3[%c0_17, %c0_18, %c0_19], %23 {strides = array<i32>} : memref<1x1x128xf32, #tpu.memory_space<vmem>>, vector<1x1x128xf32>,
      %cst_20 = arith.constant 0.000000e+00 : f32
      %25 = vector.broadcast %cst_20 : f32 to vector<1x1x128xf32>
      %c0_21 = arith.constant 0 : index
      %c0_22 = arith.constant 0 : index
      %c0_23 = arith.constant 0 : index
      %26 = vector.load %arg4[%c0_21, %c0_22, %c0_23] : memref<1x1x128xf32, #tpu.memory_space<vmem>>, vector<1x1x128xf32>
      tpu.vector_store %arg4[%c0_21, %c0_22, %c0_23], %25 {strides = array<i32>} : memref<1x1x128xf32, #tpu.memory_space<vmem>>, vector<1x1x128xf32>,
    } else {
    }
    %c0 = arith.constant 0 : index
    %c0_1 = arith.constant 0 : index
    %c0_2 = arith.constant 0 : index
    %3 = vector.load %arg2[%c0, %c0_1, %c0_2] : memref<1x16x128xbf16, #tpu.memory_space<vmem>>, vector<1x16x128xbf16>
    %4 = vector.shape_cast %3 : vector<1x16x128xbf16> to vector<16x128xbf16>
    %5 = arith.extf %4 : vector<16x128xbf16> to vector<16x128xf32>
    %c0_3 = arith.constant 0 : index
    %c0_4 = arith.constant 0 : index
    %c0_5 = arith.constant 0 : index
    %6 = vector.load %arg3[%c0_3, %c0_4, %c0_5] : memref<1x1x128xf32, #tpu.memory_space<vmem>>, vector<1x1x128xf32>
    %7 = vector.shape_cast %6 : vector<1x1x128xf32> to vector<1x128xf32>
    %cst = arith.constant dense<0.000000e+00> : vector<128xf32>
    %8 = vector.multi_reduction <add>, %5, %cst [0] : vector<16x128xf32> to vector<128xf32>
    %9 = vector.shape_cast %8 : vector<128xf32> to vector<1x128xf32>
    %10 = arith.addf %7, %9 : vector<1x128xf32>
    %c0_6 = arith.constant 0 : index
    %c0_7 = arith.constant 0 : index
    %c0_8 = arith.constant 0 : index
    %11 = vector.load %arg3[%c0_6, %c0_7, %c0_8] : memref<1x1x128xf32, #tpu.memory_space<vmem>>, vector<1x1x128xf32>
    %12 = vector.shape_cast %11 : vector<1x1x128xf32> to vector<1x128xf32>
    %13 = vector.shape_cast %10 : vector<1x128xf32> to vector<1x1x128xf32>
    tpu.vector_store %arg3[%c0_6, %c0_7, %c0_8], %13 {strides = array<i32>} : memref<1x1x128xf32, #tpu.memory_space<vmem>>, vector<1x1x128xf32>,
    %c0_9 = arith.constant 0 : index
    %c0_10 = arith.constant 0 : index
    %c0_11 = arith.constant 0 : index
    %14 = vector.load %arg4[%c0_9, %c0_10, %c0_11] : memref<1x1x128xf32, #tpu.memory_space<vmem>>, vector<1x1x128xf32>
    %15 = vector.shape_cast %14 : vector<1x1x128xf32> to vector<1x128xf32>
    %16 = arith.mulf %5, %5 : vector<16x128xf32>
    %cst_12 = arith.constant dense<0.000000e+00> : vector<128xf32>
    %17 = vector.multi_reduction <add>, %16, %cst_12 [0] : vector<16x128xf32> to vector<128xf32>
    %18 = vector.shape_cast %17 : vector<128xf32> to vector<1x128xf32>
    %19 = arith.addf %15, %18 : vector<1x128xf32>
    %c0_13 = arith.constant 0 : index
    %c0_14 = arith.constant 0 : index
    %c0_15 = arith.constant 0 : index
    %20 = vector.load %arg4[%c0_13, %c0_14, %c0_15] : memref<1x1x128xf32, #tpu.memory_space<vmem>>, vector<1x1x128xf32>
    %21 = vector.shape_cast %20 : vector<1x1x128xf32> to vector<1x128xf32>
    %22 = vector.shape_cast %19 : vector<1x128xf32> to vector<1x1x128xf32>
    tpu.vector_store %arg4[%c0_13, %c0_14, %c0_15], %22 {strides = array<i32>} : memref<1x1x128xf32, #tpu.memory_space<vmem>>, vector<1x1x128xf32>,
    return
  }
  func.func @transform_0(%arg0: i32, %arg1: i32) -> (i32, i32, i32) {
    %c0_i32 = arith.constant 0 : i32
    %c0_i32_0 = arith.constant 0 : i32
    return %arg0, %arg1, %c0_i32 : i32, i32, i32
  }
  func.func @transform_1(%arg0: i32, %arg1: i32) -> (i32, i32, i32) {
    %c0_i32 = arith.constant 0 : i32
    %c0_i32_0 = arith.constant 0 : i32
    %c0_i32_1 = arith.constant 0 : i32
    return %arg0, %c0_i32, %c0_i32_0 : i32, i32, i32
  }
  func.func @transform_2(%arg0: i32, %arg1: i32) -> (i32, i32, i32) {
    %c0_i32 = arith.constant 0 : i32
    %c0_i32_0 = arith.constant 0 : i32
    %c0_i32_1 = arith.constant 0 : i32
    return %arg0, %c0_i32, %c0_i32_0 : i32, i32, i32
  }
}

module attributes {stable_mosaic.version = 11 : i64} {
  func.func @_in_apply_kernel(%arg0: i32, %arg1: i32, %arg2: memref<1x16x128xbf16, #tpu.memory_space<vmem>>, %arg3: memref<1x1x128xf32, #tpu.memory_space<vmem>>, %arg4: memref<1x1x128xf32, #tpu.memory_space<vmem>>, %arg5: memref<1x16x128xf32, #tpu.memory_space<vmem>>) attributes {dimension_semantics = [#tpu.dimension_semantics<parallel>, #tpu.dimension_semantics<parallel>], iteration_bounds = array<i64: 2, 1>, scalar_prefetch = 0 : i64, scratch_operands = 0 : i64, tpu.core_type = #tpu.core_type<tc>, window_params = [{transform_indices = @transform_0, window_bounds = array<i64: 1, 16, 128>}, {transform_indices = @transform_1, window_bounds = array<i64: 1, 1, 128>}, {transform_indices = @transform_2, window_bounds = array<i64: 1, 1, 128>}, {transform_indices = @transform_3, window_bounds = array<i64: 1, 16, 128>}]} {
    %c0 = arith.constant 0 : index
    %c0_0 = arith.constant 0 : index
    %c0_1 = arith.constant 0 : index
    %0 = vector.load %arg2[%c0, %c0_0, %c0_1] : memref<1x16x128xbf16, #tpu.memory_space<vmem>>, vector<1x16x128xbf16>
    %1 = vector.shape_cast %0 : vector<1x16x128xbf16> to vector<16x128xbf16>
    %2 = arith.extf %1 : vector<16x128xbf16> to vector<16x128xf32>
    %c0_2 = arith.constant 0 : index
    %c0_3 = arith.constant 0 : index
    %c0_4 = arith.constant 0 : index
    %3 = vector.load %arg3[%c0_2, %c0_3, %c0_4] : memref<1x1x128xf32, #tpu.memory_space<vmem>>, vector<1x1x128xf32>
    %4 = vector.shape_cast %3 : vector<1x1x128xf32> to vector<1x128xf32>
    %5 = vector.broadcast %4 : vector<1x128xf32> to vector<16x128xf32>
    %6 = arith.mulf %2, %5 : vector<16x128xf32>
    %c0_5 = arith.constant 0 : index
    %c0_6 = arith.constant 0 : index
    %c0_7 = arith.constant 0 : index
    %7 = vector.load %arg4[%c0_5, %c0_6, %c0_7] : memref<1x1x128xf32, #tpu.memory_space<vmem>>, vector<1x1x128xf32>
    %8 = vector.shape_cast %7 : vector<1x1x128xf32> to vector<1x128xf32>
    %9 = vector.broadcast %8 : vector<1x128xf32> to vector<16x128xf32>
    %10 = arith.addf %6, %9 : vector<16x128xf32>
    %c0_8 = arith.constant 0 : index
    %c0_9 = arith.constant 0 : index
    %c0_10 = arith.constant 0 : index
    %11 = vector.load %arg5[%c0_8, %c0_9, %c0_10] : memref<1x16x128xf32, #tpu.memory_space<vmem>>, vector<1x16x128xf32>
    %12 = vector.shape_cast %11 : vector<1x16x128xf32> to vector<16x128xf32>
    %13 = vector.shape_cast %10 : vector<16x128xf32> to vector<1x16x128xf32>
    tpu.vector_store %arg5[%c0_8, %c0_9, %c0_10], %13 {strides = array<i32>} : memref<1x16x128xf32, #tpu.memory_space<vmem>>, vector<1x16x128xf32>,
    return
  }
  func.func @transform_0(%arg0: i32, %arg1: i32) -> (i32, i32, i32) {
    %c0_i32 = arith.constant 0 : i32
    %c0_i32_0 = arith.constant 0 : i32
    return %arg0, %arg1, %c0_i32 : i32, i32, i32
  }
  func.func @transform_1(%arg0: i32, %arg1: i32) -> (i32, i32, i32) {
    %c0_i32 = arith.constant 0 : i32
    %c0_i32_0 = arith.constant 0 : i32
    %c0_i32_1 = arith.constant 0 : i32
    return %arg0, %c0_i32, %c0_i32_0 : i32, i32, i32
  }
  func.func @transform_2(%arg0: i32, %arg1: i32) -> (i32, i32, i32) {
    %c0_i32 = arith.constant 0 : i32
    %c0_i32_0 = arith.constant 0 : i32
    %c0_i32_1 = arith.constant 0 : i32
    return %arg0, %c0_i32, %c0_i32_0 : i32, i32, i32
  }
  func.func @transform_3(%arg0: i32, %arg1: i32) -> (i32, i32, i32) {
    %c0_i32 = arith.constant 0 : i32
    %c0_i32_0 = arith.constant 0 : i32
    return %arg0, %arg1, %c0_i32 : i32, i32, i32
  }
}

module attributes {stable_mosaic.version = 11 : i64} {
  func.func @_spectral_kernel(%arg0: i32, %arg1: memref<24x128xf32, #tpu.memory_space<vmem>>, %arg2: memref<24x128xf32, #tpu.memory_space<vmem>>, %arg3: memref<256x256xbf16, #tpu.memory_space<vmem>>, %arg4: memref<256x256xbf16, #tpu.memory_space<vmem>>, %arg5: memref<24x128xf32, #tpu.memory_space<vmem>>, %arg6: memref<24x128xf32, #tpu.memory_space<vmem>>) attributes {dimension_semantics = [#tpu.dimension_semantics<parallel>], iteration_bounds = array<i64: 1>, scalar_prefetch = 0 : i64, scratch_operands = 0 : i64, tpu.core_type = #tpu.core_type<tc>, window_params = [{transform_indices = @transform_0, window_bounds = array<i64: 24, 128>}, {transform_indices = @transform_1, window_bounds = array<i64: 24, 128>}, {pipeline_mode = #tpu.pipeline_mode<synchronous>, transform_indices = @transform_2, window_bounds = array<i64: 256, 256>}, {pipeline_mode = #tpu.pipeline_mode<synchronous>, transform_indices = @transform_3, window_bounds = array<i64: 256, 256>}, {transform_indices = @transform_4, window_bounds = array<i64: 24, 128>}, {transform_indices = @transform_5, window_bounds = array<i64: 24, 128>}]} {
    %c0 = arith.constant 0 : index
    %c0_0 = arith.constant 0 : index
    %0 = vector.load %arg1[%c0, %c0_0] : memref<24x128xf32, #tpu.memory_space<vmem>>, vector<24x128xf32>
    %1 = arith.truncf %0 : vector<24x128xf32> to vector<24x128xbf16>
    %c0_1 = arith.constant 0 : index
    %c0_2 = arith.constant 0 : index
    %2 = vector.load %arg2[%c0_1, %c0_2] : memref<24x128xf32, #tpu.memory_space<vmem>>, vector<24x128xf32>
    %3 = arith.truncf %2 : vector<24x128xf32> to vector<24x128xbf16>
    %c0_3 = arith.constant 0 : index
    %c0_4 = arith.constant 0 : index
    %4 = vector.load %arg3[%c0_3, %c0_4] : memref<256x256xbf16, #tpu.memory_space<vmem>>, vector<128x256xbf16>
    %cst = arith.constant dense<0.000000e+00> : vector<24x256xf32>
    %5 = tpu.matmul %1, %4, %cst {dimension_numbers = #tpu.dot_dimension_numbers<[1], [0], [0], [1], [0, 0, 1, 1], [], []>} : vector<24x128xbf16>, vector<128x256xbf16>, vector<24x256xf32> -> vector<24x256xf32>
    %c128 = arith.constant 128 : index
    %c0_5 = arith.constant 0 : index
    %6 = vector.load %arg3[%c128, %c0_5] : memref<256x256xbf16, #tpu.memory_space<vmem>>, vector<128x256xbf16>
    %cst_6 = arith.constant dense<0.000000e+00> : vector<24x256xf32>
    %7 = tpu.matmul %3, %6, %cst_6 {dimension_numbers = #tpu.dot_dimension_numbers<[1], [0], [0], [1], [0, 0, 1, 1], [], []>} : vector<24x128xbf16>, vector<128x256xbf16>, vector<24x256xf32> -> vector<24x256xf32>
    %8 = arith.addf %5, %7 : vector<24x256xf32>
    %cst_7 = arith.constant 0.000000e+00 : f32
    %9 = vector.broadcast %cst_7 : f32 to vector<24x256xf32>
    %10 = arith.maximumf %8, %9 : vector<24x256xf32>
    %11 = arith.truncf %10 : vector<24x256xf32> to vector<24x256xbf16>
    %c0_8 = arith.constant 0 : index
    %c0_9 = arith.constant 0 : index
    %12 = vector.load %arg4[%c0_8, %c0_9] : memref<256x256xbf16, #tpu.memory_space<vmem>>, vector<256x128xbf16>
    %cst_10 = arith.constant dense<0.000000e+00> : vector<24x128xf32>
    %13 = tpu.matmul %11, %12, %cst_10 {dimension_numbers = #tpu.dot_dimension_numbers<[1], [0], [0], [1], [0, 0, 1, 1], [], []>} : vector<24x256xbf16>, vector<256x128xbf16>, vector<24x128xf32> -> vector<24x128xf32>
    %c0_11 = arith.constant 0 : index
    %c128_12 = arith.constant 128 : index
    %14 = vector.load %arg4[%c0_11, %c128_12] : memref<256x256xbf16, #tpu.memory_space<vmem>>, vector<256x128xbf16>
    %cst_13 = arith.constant dense<0.000000e+00> : vector<24x128xf32>
    %15 = tpu.matmul %11, %14, %cst_13 {dimension_numbers = #tpu.dot_dimension_numbers<[1], [0], [0], [1], [0, 0, 1, 1], [], []>} : vector<24x256xbf16>, vector<256x128xbf16>, vector<24x128xf32> -> vector<24x128xf32>
    %cst_14 = arith.constant 0.00999999977 : f32
    %16 = vector.broadcast %cst_14 : f32 to vector<24x128xf32>
    %17 = arith.cmpf ogt, %13, %16 : vector<24x128xf32>
    %cst_15 = arith.constant 0.00999999977 : f32
    %18 = vector.broadcast %cst_15 : f32 to vector<24x128xf32>
    %19 = arith.subf %13, %18 : vector<24x128xf32>
    %cst_16 = arith.constant -0.00999999977 : f32
    %20 = vector.broadcast %cst_16 : f32 to vector<24x128xf32>
    %21 = arith.cmpf olt, %13, %20 : vector<24x128xf32>
    %cst_17 = arith.constant 0.00999999977 : f32
    %22 = vector.broadcast %cst_17 : f32 to vector<24x128xf32>
    %23 = arith.addf %13, %22 : vector<24x128xf32>
    %cst_18 = arith.constant 0.000000e+00 : f32
    %24 = vector.broadcast %cst_18 : f32 to vector<24x128xf32>
    %25 = arith.select %21, %23, %24 : vector<24x128xi1>, vector<24x128xf32>
    %26 = arith.select %17, %19, %25 : vector<24x128xi1>, vector<24x128xf32>
    %c0_19 = arith.constant 0 : index
    %c0_20 = arith.constant 0 : index
    %27 = vector.load %arg5[%c0_19, %c0_20] : memref<24x128xf32, #tpu.memory_space<vmem>>, vector<24x128xf32>
    tpu.vector_store %arg5[%c0_19, %c0_20], %26 {strides = array<i32>} : memref<24x128xf32, #tpu.memory_space<vmem>>, vector<24x128xf32>,
    %cst_21 = arith.constant 0.00999999977 : f32
    %28 = vector.broadcast %cst_21 : f32 to vector<24x128xf32>
    %29 = arith.cmpf ogt, %15, %28 : vector<24x128xf32>
    %cst_22 = arith.constant 0.00999999977 : f32
    %30 = vector.broadcast %cst_22 : f32 to vector<24x128xf32>
    %31 = arith.subf %15, %30 : vector<24x128xf32>
    %cst_23 = arith.constant -0.00999999977 : f32
    %32 = vector.broadcast %cst_23 : f32 to vector<24x128xf32>
    %33 = arith.cmpf olt, %15, %32 : vector<24x128xf32>
    %cst_24 = arith.constant 0.00999999977 : f32
    %34 = vector.broadcast %cst_24 : f32 to vector<24x128xf32>
    %35 = arith.addf %15, %34 : vector<24x128xf32>
    %cst_25 = arith.constant 0.000000e+00 : f32
    %36 = vector.broadcast %cst_25 : f32 to vector<24x128xf32>
    %37 = arith.select %33, %35, %36 : vector<24x128xi1>, vector<24x128xf32>
    %38 = arith.select %29, %31, %37 : vector<24x128xi1>, vector<24x128xf32>
    %c0_26 = arith.constant 0 : index
    %c0_27 = arith.constant 0 : index
    %39 = vector.load %arg6[%c0_26, %c0_27] : memref<24x128xf32, #tpu.memory_space<vmem>>, vector<24x128xf32>
    tpu.vector_store %arg6[%c0_26, %c0_27], %38 {strides = array<i32>} : memref<24x128xf32, #tpu.memory_space<vmem>>, vector<24x128xf32>,
    return
  }
  func.func @transform_0(%arg0: i32) -> (i32, i32) {
    %c0_i32 = arith.constant 0 : i32
    %c0_i32_0 = arith.constant 0 : i32
    return %arg0, %c0_i32 : i32, i32
  }
  func.func @transform_1(%arg0: i32) -> (i32, i32) {
    %c0_i32 = arith.constant 0 : i32
    %c0_i32_0 = arith.constant 0 : i32
    return %arg0, %c0_i32 : i32, i32
  }
  func.func @transform_2(%arg0: i32) -> (i32, i32) {
    %c0_i32 = arith.constant 0 : i32
    %c0_i32_0 = arith.constant 0 : i32
    %c0_i32_1 = arith.constant 0 : i32
    return %c0_i32, %c0_i32_0 : i32, i32
  }
  func.func @transform_3(%arg0: i32) -> (i32, i32) {
    %c0_i32 = arith.constant 0 : i32
    %c0_i32_0 = arith.constant 0 : i32
    %c0_i32_1 = arith.constant 0 : i32
    return %c0_i32, %c0_i32_0 : i32, i32
  }
  func.func @transform_4(%arg0: i32) -> (i32, i32) {
    %c0_i32 = arith.constant 0 : i32
    %c0_i32_0 = arith.constant 0 : i32
    return %arg0, %c0_i32 : i32, i32
  }
  func.func @transform_5(%arg0: i32) -> (i32, i32) {
    %c0_i32 = arith.constant 0 : i32
    %c0_i32_0 = arith.constant 0 : i32
    return %arg0, %c0_i32 : i32, i32
  }
}

module attributes {stable_mosaic.version = 11 : i64} {
  func.func @_skip_fuse_kernel(%arg0: i32, %arg1: i32, %arg2: memref<1x16x128xbf16, #tpu.memory_space<vmem>>, %arg3: memref<128x128xbf16, #tpu.memory_space<vmem>>, %arg4: memref<1x128xf32, #tpu.memory_space<vmem>>, %arg5: memref<1x16x128xf32, #tpu.memory_space<vmem>>, %arg6: memref<1x16x128xf32, #tpu.memory_space<vmem>>, %arg7: memref<1x16x128xbf16, #tpu.memory_space<vmem>>) attributes {dimension_semantics = [#tpu.dimension_semantics<parallel>, #tpu.dimension_semantics<parallel>], iteration_bounds = array<i64: 2, 1>, scalar_prefetch = 0 : i64, scratch_operands = 0 : i64, tpu.core_type = #tpu.core_type<tc>, window_params = [{transform_indices = @transform_0, window_bounds = array<i64: 1, 16, 128>}, {pipeline_mode = #tpu.pipeline_mode<synchronous>, transform_indices = @transform_1, window_bounds = array<i64: 128, 128>}, {pipeline_mode = #tpu.pipeline_mode<synchronous>, transform_indices = @transform_2, window_bounds = array<i64: 1, 128>}, {transform_indices = @transform_3, window_bounds = array<i64: 1, 16, 128>}, {transform_indices = @transform_4, window_bounds = array<i64: 1, 16, 128>}, {transform_indices = @transform_5, window_bounds = array<i64: 1, 16, 128>}]} {
    %c0 = arith.constant 0 : index
    %c0_0 = arith.constant 0 : index
    %c0_1 = arith.constant 0 : index
    %0 = vector.load %arg2[%c0, %c0_0, %c0_1] : memref<1x16x128xbf16, #tpu.memory_space<vmem>>, vector<1x16x128xbf16>
    %1 = vector.shape_cast %0 : vector<1x16x128xbf16> to vector<16x128xbf16>
    %c0_2 = arith.constant 0 : index
    %c0_3 = arith.constant 0 : index
    %2 = vector.load %arg3[%c0_2, %c0_3] : memref<128x128xbf16, #tpu.memory_space<vmem>>, vector<128x128xbf16>
    %cst = arith.constant dense<0.000000e+00> : vector<16x128xf32>
    %3 = tpu.matmul %1, %2, %cst {dimension_numbers = #tpu.dot_dimension_numbers<[1], [0], [0], [1], [0, 0, 1, 1], [], []>} : vector<16x128xbf16>, vector<128x128xbf16>, vector<16x128xf32> -> vector<16x128xf32>
    %c0_4 = arith.constant 0 : index
    %c0_5 = arith.constant 0 : index
    %4 = vector.load %arg4[%c0_4, %c0_5] : memref<1x128xf32, #tpu.memory_space<vmem>>, vector<1x128xf32>
    %5 = vector.broadcast %4 : vector<1x128xf32> to vector<16x128xf32>
    %6 = arith.addf %3, %5 : vector<16x128xf32>
    %c0_6 = arith.constant 0 : index
    %c0_7 = arith.constant 0 : index
    %c0_8 = arith.constant 0 : index
    %7 = vector.load %arg5[%c0_6, %c0_7, %c0_8] : memref<1x16x128xf32, #tpu.memory_space<vmem>>, vector<1x16x128xf32>
    %8 = vector.shape_cast %7 : vector<1x16x128xf32> to vector<16x128xf32>
    %9 = arith.addf %6, %8 : vector<16x128xf32>
    %c0_9 = arith.constant 0 : index
    %c0_10 = arith.constant 0 : index
    %c0_11 = arith.constant 0 : index
    %10 = vector.load %arg6[%c0_9, %c0_10, %c0_11] : memref<1x16x128xf32, #tpu.memory_space<vmem>>, vector<1x16x128xf32>
    %11 = vector.shape_cast %10 : vector<1x16x128xf32> to vector<16x128xf32>
    %12 = arith.addf %9, %11 : vector<16x128xf32>
    %13 = arith.truncf %12 : vector<16x128xf32> to vector<16x128xbf16>
    %c0_12 = arith.constant 0 : index
    %c0_13 = arith.constant 0 : index
    %c0_14 = arith.constant 0 : index
    %14 = vector.load %arg7[%c0_12, %c0_13, %c0_14] : memref<1x16x128xbf16, #tpu.memory_space<vmem>>, vector<1x16x128xbf16>
    %15 = vector.shape_cast %14 : vector<1x16x128xbf16> to vector<16x128xbf16>
    %16 = vector.shape_cast %13 : vector<16x128xbf16> to vector<1x16x128xbf16>
    tpu.vector_store %arg7[%c0_12, %c0_13, %c0_14], %16 {strides = array<i32>} : memref<1x16x128xbf16, #tpu.memory_space<vmem>>, vector<1x16x128xbf16>,
    return
  }
  func.func @transform_0(%arg0: i32, %arg1: i32) -> (i32, i32, i32) {
    %c0_i32 = arith.constant 0 : i32
    %c0_i32_0 = arith.constant 0 : i32
    return %arg0, %arg1, %c0_i32 : i32, i32, i32
  }
  func.func @transform_1(%arg0: i32, %arg1: i32) -> (i32, i32) {
    %c0_i32 = arith.constant 0 : i32
    %c0_i32_0 = arith.constant 0 : i32
    %c0_i32_1 = arith.constant 0 : i32
    return %c0_i32, %c0_i32_0 : i32, i32
  }
  func.func @transform_2(%arg0: i32, %arg1: i32) -> (i32, i32) {
    %c0_i32 = arith.constant 0 : i32
    %c0_i32_0 = arith.constant 0 : i32
    %c0_i32_1 = arith.constant 0 : i32
    return %c0_i32, %c0_i32_0 : i32, i32
  }
  func.func @transform_3(%arg0: i32, %arg1: i32) -> (i32, i32, i32) {
    %c0_i32 = arith.constant 0 : i32
    %c0_i32_0 = arith.constant 0 : i32
    return %arg0, %arg1, %c0_i32 : i32, i32, i32
  }
  func.func @transform_4(%arg0: i32, %arg1: i32) -> (i32, i32, i32) {
    %c0_i32 = arith.constant 0 : i32
    %c0_i32_0 = arith.constant 0 : i32
    return %arg0, %arg1, %c0_i32 : i32, i32, i32
  }
  func.func @transform_5(%arg0: i32, %arg1: i32) -> (i32, i32, i32) {
    %c0_i32 = arith.constant 0 : i32
    %c0_i32_0 = arith.constant 0 : i32
    return %arg0, %arg1, %c0_i32 : i32, i32, i32
  }
}

module attributes {stable_mosaic.version = 11 : i64} {
  func.func @_in_mlp_kernel(%arg0: i32, %arg1: i32, %arg2: memref<1x16x128xbf16, #tpu.memory_space<vmem>>, %arg3: memref<1x1x128xf32, #tpu.memory_space<vmem>>, %arg4: memref<1x1x128xf32, #tpu.memory_space<vmem>>, %arg5: memref<128x512xbf16, #tpu.memory_space<vmem>>, %arg6: memref<1x512xf32, #tpu.memory_space<vmem>>, %arg7: memref<512x128xbf16, #tpu.memory_space<vmem>>, %arg8: memref<1x128xf32, #tpu.memory_space<vmem>>, %arg9: memref<1x16x128xbf16, #tpu.memory_space<vmem>>, %arg10: memref<1x16x128xbf16, #tpu.memory_space<vmem>>) attributes {dimension_semantics = [#tpu.dimension_semantics<parallel>, #tpu.dimension_semantics<parallel>], iteration_bounds = array<i64: 2, 1>, scalar_prefetch = 0 : i64, scratch_operands = 0 : i64, tpu.core_type = #tpu.core_type<tc>, window_params = [{transform_indices = @transform_0, window_bounds = array<i64: 1, 16, 128>}, {transform_indices = @transform_1, window_bounds = array<i64: 1, 1, 128>}, {transform_indices = @transform_2, window_bounds = array<i64: 1, 1, 128>}, {pipeline_mode = #tpu.pipeline_mode<synchronous>, transform_indices = @transform_3, window_bounds = array<i64: 128, 512>}, {pipeline_mode = #tpu.pipeline_mode<synchronous>, transform_indices = @transform_4, window_bounds = array<i64: 1, 512>}, {pipeline_mode = #tpu.pipeline_mode<synchronous>, transform_indices = @transform_5, window_bounds = array<i64: 512, 128>}, {pipeline_mode = #tpu.pipeline_mode<synchronous>, transform_indices = @transform_6, window_bounds = array<i64: 1, 128>}, {transform_indices = @transform_7, window_bounds = array<i64: 1, 16, 128>}, {transform_indices = @transform_8, window_bounds = array<i64: 1, 16, 128>}]} {
    %c0 = arith.constant 0 : index
    %c0_0 = arith.constant 0 : index
    %c0_1 = arith.constant 0 : index
    %0 = vector.load %arg2[%c0, %c0_0, %c0_1] : memref<1x16x128xbf16, #tpu.memory_space<vmem>>, vector<1x16x128xbf16>
    %1 = vector.shape_cast %0 : vector<1x16x128xbf16> to vector<16x128xbf16>
    %2 = arith.extf %1 : vector<16x128xbf16> to vector<16x128xf32>
    %c0_2 = arith.constant 0 : index
    %c0_3 = arith.constant 0 : index
    %c0_4 = arith.constant 0 : index
    %3 = vector.load %arg3[%c0_2, %c0_3, %c0_4] : memref<1x1x128xf32, #tpu.memory_space<vmem>>, vector<1x1x128xf32>
    %4 = vector.shape_cast %3 : vector<1x1x128xf32> to vector<1x128xf32>
    %5 = vector.broadcast %4 : vector<1x128xf32> to vector<16x128xf32>
    %6 = arith.mulf %2, %5 : vector<16x128xf32>
    %c0_5 = arith.constant 0 : index
    %c0_6 = arith.constant 0 : index
    %c0_7 = arith.constant 0 : index
    %7 = vector.load %arg4[%c0_5, %c0_6, %c0_7] : memref<1x1x128xf32, #tpu.memory_space<vmem>>, vector<1x1x128xf32>
    %8 = vector.shape_cast %7 : vector<1x1x128xf32> to vector<1x128xf32>
    %9 = vector.broadcast %8 : vector<1x128xf32> to vector<16x128xf32>
    %10 = arith.addf %6, %9 : vector<16x128xf32>
    %11 = arith.truncf %10 : vector<16x128xf32> to vector<16x128xbf16>
    %c0_8 = arith.constant 0 : index
    %c0_9 = arith.constant 0 : index
    %12 = vector.load %arg5[%c0_8, %c0_9] : memref<128x512xbf16, #tpu.memory_space<vmem>>, vector<128x512xbf16>
    %cst = arith.constant dense<0.000000e+00> : vector<16x512xf32>
    %13 = tpu.matmul %11, %12, %cst {dimension_numbers = #tpu.dot_dimension_numbers<[1], [0], [0], [1], [0, 0, 1, 1], [], []>} : vector<16x128xbf16>, vector<128x512xbf16>, vector<16x512xf32> -> vector<16x512xf32>
    %c0_10 = arith.constant 0 : index
    %c0_11 = arith.constant 0 : index
    %14 = vector.load %arg6[%c0_10, %c0_11] : memref<1x512xf32, #tpu.memory_space<vmem>>, vector<1x512xf32>
    %15 = vector.broadcast %14 : vector<1x512xf32> to vector<16x512xf32>
    %16 = arith.addf %13, %15 : vector<16x512xf32>
    %cst_12 = arith.constant 5.000000e-01 : f32
    %17 = vector.broadcast %cst_12 : f32 to vector<16x512xf32>
    %18 = arith.mulf %17, %16 : vector<16x512xf32>
    %cst_13 = arith.constant 4.471500e-02 : f32
    %19 = vector.broadcast %cst_13 : f32 to vector<16x512xf32>
    %20 = arith.mulf %19, %16 : vector<16x512xf32>
    %21 = arith.mulf %20, %16 : vector<16x512xf32>
    %22 = arith.mulf %21, %16 : vector<16x512xf32>
    %23 = arith.addf %16, %22 : vector<16x512xf32>
    %cst_14 = arith.constant 0.797884583 : f32
    %24 = vector.broadcast %cst_14 : f32 to vector<16x512xf32>
    %25 = arith.mulf %24, %23 : vector<16x512xf32>
    %26 = math.tanh %25 : vector<16x512xf32>
    %cst_15 = arith.constant 1.000000e+00 : f32
    %27 = vector.broadcast %cst_15 : f32 to vector<16x512xf32>
    %28 = arith.addf %27, %26 : vector<16x512xf32>
    %29 = arith.mulf %18, %28 : vector<16x512xf32>
    %30 = arith.truncf %29 : vector<16x512xf32> to vector<16x512xbf16>
    %c0_16 = arith.constant 0 : index
    %c0_17 = arith.constant 0 : index
    %31 = vector.load %arg7[%c0_16, %c0_17] : memref<512x128xbf16, #tpu.memory_space<vmem>>, vector<512x128xbf16>
    %cst_18 = arith.constant dense<0.000000e+00> : vector<16x128xf32>
    %32 = tpu.matmul %30, %31, %cst_18 {dimension_numbers = #tpu.dot_dimension_numbers<[1], [0], [0], [1], [0, 0, 1, 1], [], []>} : vector<16x512xbf16>, vector<512x128xbf16>, vector<16x128xf32> -> vector<16x128xf32>
    %c0_19 = arith.constant 0 : index
    %c0_20 = arith.constant 0 : index
    %33 = vector.load %arg8[%c0_19, %c0_20] : memref<1x128xf32, #tpu.memory_space<vmem>>, vector<1x128xf32>
    %34 = vector.broadcast %33 : vector<1x128xf32> to vector<16x128xf32>
    %35 = arith.addf %32, %34 : vector<16x128xf32>
    %c0_21 = arith.constant 0 : index
    %c0_22 = arith.constant 0 : index
    %c0_23 = arith.constant 0 : index
    %36 = vector.load %arg9[%c0_21, %c0_22, %c0_23] : memref<1x16x128xbf16, #tpu.memory_space<vmem>>, vector<1x16x128xbf16>
    %37 = vector.shape_cast %36 : vector<1x16x128xbf16> to vector<16x128xbf16>
    %38 = arith.extf %37 : vector<16x128xbf16> to vector<16x128xf32>
    %39 = arith.addf %35, %38 : vector<16x128xf32>
    %40 = arith.truncf %39 : vector<16x128xf32> to vector<16x128xbf16>
    %c0_24 = arith.constant 0 : index
    %c0_25 = arith.constant 0 : index
    %c0_26 = arith.constant 0 : index
    %41 = vector.load %arg10[%c0_24, %c0_25, %c0_26] : memref<1x16x128xbf16, #tpu.memory_space<vmem>>, vector<1x16x128xbf16>
    %42 = vector.shape_cast %41 : vector<1x16x128xbf16> to vector<16x128xbf16>
    %43 = vector.shape_cast %40 : vector<16x128xbf16> to vector<1x16x128xbf16>
    tpu.vector_store %arg10[%c0_24, %c0_25, %c0_26], %43 {strides = array<i32>} : memref<1x16x128xbf16, #tpu.memory_space<vmem>>, vector<1x16x128xbf16>,
    return
  }
  func.func @transform_0(%arg0: i32, %arg1: i32) -> (i32, i32, i32) {
    %c0_i32 = arith.constant 0 : i32
    %c0_i32_0 = arith.constant 0 : i32
    return %arg0, %arg1, %c0_i32 : i32, i32, i32
  }
  func.func @transform_1(%arg0: i32, %arg1: i32) -> (i32, i32, i32) {
    %c0_i32 = arith.constant 0 : i32
    %c0_i32_0 = arith.constant 0 : i32
    %c0_i32_1 = arith.constant 0 : i32
    return %arg0, %c0_i32, %c0_i32_0 : i32, i32, i32
  }
  func.func @transform_2(%arg0: i32, %arg1: i32) -> (i32, i32, i32) {
    %c0_i32 = arith.constant 0 : i32
    %c0_i32_0 = arith.constant 0 : i32
    %c0_i32_1 = arith.constant 0 : i32
    return %arg0, %c0_i32, %c0_i32_0 : i32, i32, i32
  }
  func.func @transform_3(%arg0: i32, %arg1: i32) -> (i32, i32) {
    %c0_i32 = arith.constant 0 : i32
    %c0_i32_0 = arith.constant 0 : i32
    %c0_i32_1 = arith.constant 0 : i32
    return %c0_i32, %c0_i32_0 : i32, i32
  }
  func.func @transform_4(%arg0: i32, %arg1: i32) -> (i32, i32) {
    %c0_i32 = arith.constant 0 : i32
    %c0_i32_0 = arith.constant 0 : i32
    %c0_i32_1 = arith.constant 0 : i32
    return %c0_i32, %c0_i32_0 : i32, i32
  }
  func.func @transform_5(%arg0: i32, %arg1: i32) -> (i32, i32) {
    %c0_i32 = arith.constant 0 : i32
    %c0_i32_0 = arith.constant 0 : i32
    %c0_i32_1 = arith.constant 0 : i32
    return %c0_i32, %c0_i32_0 : i32, i32
  }
  func.func @transform_6(%arg0: i32, %arg1: i32) -> (i32, i32) {
    %c0_i32 = arith.constant 0 : i32
    %c0_i32_0 = arith.constant 0 : i32
    %c0_i32_1 = arith.constant 0 : i32
    return %c0_i32, %c0_i32_0 : i32, i32
  }
  func.func @transform_7(%arg0: i32, %arg1: i32) -> (i32, i32, i32) {
    %c0_i32 = arith.constant 0 : i32
    %c0_i32_0 = arith.constant 0 : i32
    return %arg0, %arg1, %c0_i32 : i32, i32, i32
  }
  func.func @transform_8(%arg0: i32, %arg1: i32) -> (i32, i32, i32) {
    %c0_i32 = arith.constant 0 : i32
    %c0_i32_0 = arith.constant 0 : i32
    return %arg0, %arg1, %c0_i32 : i32, i32, i32
  }
}

module attributes {stable_mosaic.version = 11 : i64} {
  func.func @_head_kernel(%arg0: i32, %arg1: i32, %arg2: memref<1x16x128xbf16, #tpu.memory_space<vmem>>, %arg3: memref<128x72xbf16, #tpu.memory_space<vmem>>, %arg4: memref<1x16x72xf32, #tpu.memory_space<vmem>>) attributes {dimension_semantics = [#tpu.dimension_semantics<parallel>, #tpu.dimension_semantics<parallel>], iteration_bounds = array<i64: 2, 1>, scalar_prefetch = 0 : i64, scratch_operands = 0 : i64, tpu.core_type = #tpu.core_type<tc>, window_params = [{transform_indices = @transform_0, window_bounds = array<i64: 1, 16, 128>}, {pipeline_mode = #tpu.pipeline_mode<synchronous>, transform_indices = @transform_1, window_bounds = array<i64: 128, 72>}, {transform_indices = @transform_2, window_bounds = array<i64: 1, 16, 72>}]} {
    %c0 = arith.constant 0 : index
    %c0_0 = arith.constant 0 : index
    %c0_1 = arith.constant 0 : index
    %0 = vector.load %arg2[%c0, %c0_0, %c0_1] : memref<1x16x128xbf16, #tpu.memory_space<vmem>>, vector<1x16x128xbf16>
    %1 = vector.shape_cast %0 : vector<1x16x128xbf16> to vector<16x128xbf16>
    %c0_2 = arith.constant 0 : index
    %c0_3 = arith.constant 0 : index
    %2 = vector.load %arg3[%c0_2, %c0_3] : memref<128x72xbf16, #tpu.memory_space<vmem>>, vector<128x72xbf16>
    %cst = arith.constant dense<0.000000e+00> : vector<16x72xf32>
    %3 = tpu.matmul %1, %2, %cst {dimension_numbers = #tpu.dot_dimension_numbers<[1], [0], [0], [1], [0, 0, 1, 1], [], []>} : vector<16x128xbf16>, vector<128x72xbf16>, vector<16x72xf32> -> vector<16x72xf32>
    %c0_4 = arith.constant 0 : index
    %c0_5 = arith.constant 0 : index
    %c0_6 = arith.constant 0 : index
    %4 = vector.load %arg4[%c0_4, %c0_5, %c0_6] : memref<1x16x72xf32, #tpu.memory_space<vmem>>, vector<1x16x72xf32>
    %5 = vector.shape_cast %4 : vector<1x16x72xf32> to vector<16x72xf32>
    %6 = vector.shape_cast %3 : vector<16x72xf32> to vector<1x16x72xf32>
    tpu.vector_store %arg4[%c0_4, %c0_5, %c0_6], %6 {strides = array<i32>} : memref<1x16x72xf32, #tpu.memory_space<vmem>>, vector<1x16x72xf32>,
    return
  }
  func.func @transform_0(%arg0: i32, %arg1: i32) -> (i32, i32, i32) {
    %c0_i32 = arith.constant 0 : i32
    %c0_i32_0 = arith.constant 0 : i32
    return %arg0, %arg1, %c0_i32 : i32, i32, i32
  }
  func.func @transform_1(%arg0: i32, %arg1: i32) -> (i32, i32) {
    %c0_i32 = arith.constant 0 : i32
    %c0_i32_0 = arith.constant 0 : i32
    %c0_i32_1 = arith.constant 0 : i32
    return %c0_i32, %c0_i32_0 : i32, i32
  }
  func.func @transform_2(%arg0: i32, %arg1: i32) -> (i32, i32, i32) {
    %c0_i32 = arith.constant 0 : i32
    %c0_i32_0 = arith.constant 0 : i32
    return %arg0, %arg1, %c0_i32 : i32, i32, i32
  }
}

</mosaic_0001>

<bundles_post_ra>
// kernel: _lambda_.14
= control target key start
LH: loop header
LB: loop body
LE: loop exit
PB: predicated region body
PF: predicated region fallthrough
CT: control target
= control target key end

     0   :  { %s549_s15 = smov 0   ;;  %s551_s16 = smov 0   ;;  %s606_s0 = inlined_call_operand.vmem [shape: f32[2,16,72], index: 0, kind: input, shape index: {}]   ;;  %s607_s1 = inlined_call_operand.vmem [shape: bf16[72,128], index: 1, kind: input, shape index: {}]   ;;  %s608_s2 = inlined_call_operand.vmem [shape: f32[1,128], index: 2, kind: input, shape index: {}]   ;;  %s609_s3 = inlined_call_operand.vmem [shape: f32[1,16,128], index: 3, kind: input, shape index: {}]   ;;  %s610_s4 = inlined_call_operand.vmem [shape: bf16[2,16,128], index: 4, kind: output, shape index: {}]  }
   0x1   :  { %s553_s17 = smov 0  }
   0x2 LB: > { %s26_s18 = sadd.s32 1, %s518_s16  ;;  %p440_p0 = scmp.ge.s32.totalorder %s522_s17, 1  ;;  %s522_s17 = sphi %s553_s17, %s14_s17   ;;  %s518_s16 = sphi %s551_s16, %s612_s16   ;;  %s514_s15 = sphi %s549_s15, %s611_s15  }
   0x3   : > { %p28_p1 = scmp.ge.s32.totalorder %s26_s18, 2  ;;  %p194_p2 = scmp.lt.s32.totalorder %s522_s17, 3 }
   0x5   : > { %s614_s18 = smov (%p28_p1, %s26_s18), 0  ;;  %p195_p3 = pnand %p440_p0, %p194_p2 }
   0x6   : > { %p234_p4 = scmp.lt.s32.totalorder (!%p195_p3), %s514_s15, 1 }
   0x7   : > { %198 = sbr.rel (%p195_p3) target bundleno = 178 (0xb2), region = 36 }
   0xc   : > { %v271_v0 = vld [vmem:[%s607_s1 + $0x20] sm:$0xf]  ;;  %vm307_vm0 = vcmask 1043456   ;;  %v469_v4 = vld [vmem:[%s607_s1 + $0x18] sm:$0xff]  ;;  %s616_s15 = smov (!%p234_p4, %s514_s15), 1  ;;  %v468_v5 = vld [vmem:[%s607_s1 + $0x10] sm:$0xff] }
   0xd   : > { %v293_v1 = vunpack.c.l.b16 %v271_v0  ;;  %s464_s25 = sshll.u32 %s616_s15, 4  ;;  %v467_v6 = vld [vmem:[%s607_s1 + $0x8] sm:$0xff]  ;;  %v466_v7 = vld [vmem:[%s607_s1] sm:$0xff]  ;;  %vm303_vm1 = vcmask 588800   ;;  %s465_s13 = sshll.u32 %s616_s15, 3 }
   0xe   : > { %s241_s30 = scalar_lea.vmem %s606_s0, %s464_s25  ;;  %v499_v12 = vld [vmem:[%s608_s2] ss:$0 sm:$0xff]  ;;  %v326_v16 = vld [vmem:[%s609_s3 + $0x8] sm:$0xff]  ;;  %s257_s20 = scalar_lea.vmem %s610_s4, %s465_s13 }
   0xf   : > { %v298_v2 = vpack.c.b16 %v293_v1, %v293_v1  ;;  %v260_v8 = vld [vmem:[%s241_s30] sm:$0xff]  ;;  %v261_v9 = vld [vmem:[%s241_s30 + $0x8] sm:$0xff] }
  0x10   : > { %v262_v10 = vpack.c.bf16 %v261_v9, %v260_v8  ;;  %v325_v14 = vld [vmem:[%s609_s3] sm:$0xff] }
  0x11   : > { %v309_v3 = vsel %vm307_vm0, %v298_v2, 0 }
  0x12   : > { %314 = vmatpush.bf16.msra.mxu0 %v309_v3 }
  0x16   : > { %315 = vmatpush.bf16.msra.mxu0 %v469_v4 }
  0x1a   : > { %316 = vmatpush.bf16.msra.mxu0 %v468_v5 }
  0x1e   : > { %317 = vmatpush.bf16.msra.mxu0 %v467_v6 }
  0x22   : > { %318 = vmatpush.bf16.msra.mxu0 %v466_v7 }
  0x25   : > { %461 = vmatmul.msk.bf16.vlgmr.msra.gmra.mxu0 %vm303_vm1, %v262_v10 }
  0xa2   : > { %v320_v11 = vpop.f32.mrf.mxu0 }
  0xa3   : > { %v321_v13 = vadd.f32 %v499_v12, %v320_v11 }
  0xa5   : > { %v327_v18 = vadd.f32 %v325_v14, %v321_v13 }
  0xaa   : > { %v322_v15 = vpop.f32.mrf.mxu0 }
  0xab   : > { %v323_v17 = vadd.f32 %v499_v12, %v322_v15 }
  0xad   : > { %v328_v19 = vadd.f32 %v326_v16, %v323_v17 }
  0xaf   : > { %v473_v20 = vpack.c.bf16 %v328_v19, %v327_v18 }
  0xb1   : > { %474 = vst [vmem:[%s257_s20] sm:$0xff] %v473_v20  }
  0xb2 PF: > { %s14_s17 = sadd.s32 1, %s522_s17   ;;  %s611_s15 = smov %s518_s16 }
  0xb3   : > { %p11_p5 = scmp.ge.s32.totalorder %s14_s17, 4   ;;  %s612_s16 = smov %s614_s18 }
  0xb5   :  { %13 = sbr.rel (!%p11_p5) target bundleno = 2 (0x2), region = 69 }

// kernel: _lambda_.15
= control target key start
LH: loop header
LB: loop body
LE: loop exit
PB: predicated region body
PF: predicated region fallthrough
CT: control target
= control target key end

     0   :  { %s374_s9 = smov 0   ;;  %s376_s10 = smov 0   ;;  %s410_s0 = inlined_call_operand.vmem [shape: bf16[2,16,128], index: 0, kind: input, shape index: {}]   ;;  %s411_s1 = inlined_call_operand.vmem [shape: f32[2,1,128], index: 1, kind: output, shape index: {0}]   ;;  %s412_s2 = inlined_call_operand.vmem [shape: f32[2,1,128], index: 2, kind: output, shape index: {1}]  }
   0x1   :  { %s378_s11 = smov 0  }
   0x2 LB: > { %s25_s12 = sadd.s32 1, %s352_s10  ;;  %p299_p0 = scmp.ge.s32.totalorder %s356_s11, 1  ;;  %s356_s11 = sphi %s378_s11, %s13_s11   ;;  %s352_s10 = sphi %s376_s10, %s414_s10   ;;  %s348_s9 = sphi %s374_s9, %s413_s9  }
   0x3   : > { %p27_p1 = scmp.ge.s32.totalorder %s25_s12, 2  ;;  %p134_p2 = scmp.lt.s32.totalorder %s356_s11, 3 }
   0x5   : > { %s416_s12 = smov (%p27_p1, %s25_s12), 0  ;;  %p135_p3 = pnand %p299_p0, %p134_p2 }
   0x6   : > { %p162_p4 = scmp.lt.s32.totalorder (!%p135_p3), %s348_s9, 1 }
   0x7   : > { %138 = sbr.rel (%p135_p3) target bundleno = 37 (0x25), region = 24 }
   0xc   : > { %s418_s9 = smov (!%p162_p4, %s348_s9), 1  ;;  %v358_v0 = vmov 0.0  }
   0xd   : > { %s304_s13 = sshll.u32 %s418_s9, 3  ;;  %s173_s16 = scalar_lea.vmem %s411_s1, %s418_s9 }
   0xe   : > { %s169_s19 = scalar_lea.vmem %s410_s0, %s304_s13  ;;  %181 = vst [vmem:[%s173_s16] sm:$0x1] %v358_v0  ;;  %s176_s22 = scalar_lea.vmem %s412_s2, %s418_s9 }
   0xf   : > { %v306_v1 = vld [vmem:[%s169_s19] sm:$0xff]   ;;  %182 = vst [vmem:[%s176_s22] sm:$0x1] %v358_v0 }
  0x10   : > { %v307_v2 = vunpack.c.l.bf16 %v306_v1  ;;  %v308_v3 = vunpack.c.h.bf16 %v306_v1 }
  0x12   : > { %v198_v4 = vmul.f32 %v307_v2, %v307_v2  ;;  %v199_v5 = vmul.f32 %v308_v3, %v308_v3  ;;  %v188_v6 = vadd.f32 %v308_v3, %v307_v2 }
  0x14   : > { %v189_v7 = vrot.slane %v188_v6, 4  ;;  %v200_v8 = vadd.f32 %v199_v5, %v198_v4 }
  0x15   : > { %v187_v17 = vld [vmem:[%s173_s16] sm:$0x1] }
  0x16   : > { %v190_v9 = vadd.f32 %v189_v7, %v188_v6  ;;  %v201_v10 = vrot.slane %v200_v8, 4  ;;  %v197_v20 = vld [vmem:[%s176_s22] sm:$0x1] }
  0x18   : > { %v191_v11 = vrot.slane %v190_v9, 2  ;;  %v202_v12 = vadd.f32 %v201_v10, %v200_v8 }
  0x1a   : > { %v192_v13 = vadd.f32 %v191_v11, %v190_v9  ;;  %v203_v14 = vrot.slane %v202_v12, 2 }
  0x1c   : > { %v193_v15 = vrot.slane %v192_v13, 1  ;;  %v204_v16 = vadd.f32 %v203_v14, %v202_v12 }
  0x1e   : > { %v194_v18 = vadd.f32 %v193_v15, %v192_v13  ;;  %v205_v19 = vrot.slane %v204_v16, 1 }
  0x20   : > { %v195_v21 = vadd.f32 %v194_v18, %v187_v17  ;;  %v206_v22 = vadd.f32 %v205_v19, %v204_v16 }
  0x22   : > { %196 = vst [vmem:[%s173_s16] sm:$0x1] %v195_v21  ;;  %v207_v23 = vadd.f32 %v206_v22, %v197_v20 }
  0x24   : > { %208 = vst [vmem:[%s176_s22] sm:$0x1] %v207_v23 }
  0x25 PF: > { %s13_s11 = sadd.s32 1, %s356_s11   ;;  %s413_s9 = smov %s352_s10 }
  0x26   : > { %p10_p5 = scmp.ge.s32.totalorder %s13_s11, 4   ;;  %s414_s10 = smov %s416_s12 }
  0x28   :  { %12 = sbr.rel (!%p10_p5) target bundleno = 2 (0x2), region = 70 }

// kernel: _lambda_.16
= control target key start
LH: loop header
LB: loop body
LE: loop exit
PB: predicated region body
PF: predicated region fallthrough
CT: control target
= control target key end

     0   :  { %s448_s12 = smov 0   ;;  %s450_s13 = smov 0   ;;  %s484_s0 = inlined_call_operand.vmem [shape: bf16[2,16,128], index: 0, kind: input, shape index: {}]   ;;  %s485_s1 = inlined_call_operand.vmem [shape: f32[2,1,128], index: 1, kind: input, shape index: {}]   ;;  %s486_s2 = inlined_call_operand.vmem [shape: f32[2,1,128], index: 2, kind: input, shape index: {}]   ;;  %s487_s3 = inlined_call_operand.vmem [shape: f32[2,16,128], index: 3, kind: output, shape index: {}]  }
   0x1   :  { %s452_s14 = smov 0  }
   0x2 LB: > { %s25_s15 = sadd.s32 1, %s422_s13  ;;  %p365_p0 = scmp.ge.s32.totalorder %s426_s14, 1  ;;  %s426_s14 = sphi %s452_s14, %s13_s14   ;;  %s422_s13 = sphi %s450_s13, %s489_s13   ;;  %s418_s12 = sphi %s448_s12, %s488_s12  }
   0x3   : > { %p27_p1 = scmp.ge.s32.totalorder %s25_s15, 2  ;;  %p174_p2 = scmp.lt.s32.totalorder %s426_s14, 3 }
   0x5   : > { %s491_s15 = smov (%p27_p1, %s25_s15), 0  ;;  %p175_p3 = pnand %p365_p0, %p174_p2 }
   0x6   : > { %p213_p4 = scmp.lt.s32.totalorder (!%p175_p3), %s418_s12, 1 }
   0x7   : > { %178 = sbr.rel (%p175_p3) target bundleno = 24 (0x18), region = 32 }
   0xc   : > { %s493_s12 = smov (!%p213_p4, %s418_s12), 1 }
   0xd   : > { %s372_s16 = sshll.u32 %s493_s12, 3  ;;  %s224_s19 = scalar_lea.vmem %s485_s1, %s493_s12 }
   0xe   : > { %s220_s22 = scalar_lea.vmem %s484_s0, %s372_s16  ;;  %s227_s25 = scalar_lea.vmem %s486_s2, %s493_s12  ;;  %v402_v0 = vld [vmem:[%s224_s19] ss:$0 sm:$0xff] }
   0xf   : > { %v375_v1 = vld [vmem:[%s220_s22] sm:$0xff]   ;;  %s373_s26 = sshll.u32 %s493_s12, 4 }
  0x10   : > { %v376_v2 = vunpack.c.l.bf16 %v375_v1  ;;  %v403_v3 = vld [vmem:[%s227_s25] ss:$0 sm:$0xff]  ;;  %v377_v4 = vunpack.c.h.bf16 %v375_v1  ;;  %s236_s29 = scalar_lea.vmem %s487_s3, %s373_s26 }
  0x12   : > { %v246_v5 = vmul.f32 %v402_v0, %v376_v2  ;;  %v247_v6 = vmul.f32 %v402_v0, %v377_v4 }
  0x14   : > { %v252_v7 = vadd.f32 %v403_v3, %v246_v5  ;;  %v253_v8 = vadd.f32 %v403_v3, %v247_v6 }
  0x16   : > { %254 = vst [vmem:[%s236_s29] sm:$0xff] %v252_v7 }
  0x17   : > { %255 = vst [vmem:[%s236_s29 + $0x8] sm:$0xff] %v253_v8 }
  0x18 PF: > { %s13_s14 = sadd.s32 1, %s426_s14   ;;  %s488_s12 = smov %s422_s13 }
  0x19   : > { %p10_p5 = scmp.ge.s32.totalorder %s13_s14, 4   ;;  %s489_s13 = smov %s491_s15 }
  0x1b   :  { %12 = sbr.rel (!%p10_p5) target bundleno = 2 (0x2), region = 68 }

// kernel: _lambda_.17
= control target key start
LH: loop header
LB: loop body
LE: loop exit
PB: predicated region body
PF: predicated region fallthrough
CT: control target
= control target key end

     0   :  { %s1457_s2 = inlined_call_operand.vmem [shape: bf16[256,256], index: 2, kind: input, shape index: {}]   ;;  %s1458_s1 = inlined_call_operand.vmem [shape: f32[24,128], index: 1, kind: input, shape index: {}]   ;;  %s1459_s3 = inlined_call_operand.vmem [shape: bf16[256,256], index: 3, kind: input, shape index: {}]   ;;  %s1460_s0 = inlined_call_operand.vmem [shape: f32[24,128], index: 0, kind: input, shape index: {}]   ;;  %s1461_s4 = inlined_call_operand.vmem [shape: f32[24,128], index: 4, kind: output, shape index: {0}]   ;;  %s1462_s5 = inlined_call_operand.vmem [shape: f32[24,128], index: 5, kind: output, shape index: {1}]  }
   0x1   :  { %v739_v0 = vld [vmem:[%s1457_s2 + $0xf0] sm:$0xf]  ;;  %v974_v1 = vld [vmem:[%s1457_s2 + $0xf4] sm:$0xf0]  ;;  %v973_v2 = vld [vmem:[%s1457_s2 + $0xf4] sm:$0xf] }
   0x2   :  { %v740_v3 = vor.u32 %v974_v1, %v739_v0  ;;  %v741_v4 = vld [vmem:[%s1457_s2 + $0xf8] sm:$0xf0]  ;;  %v803_v5 = vld [vmem:[%s1457_s2 + $0x70] sm:$0xf]  ;;  %v958_v6 = vld [vmem:[%s1457_s2 + $0x74] sm:$0xf0] }
   0x3   :  { %v744_v7 = vor.u32 %v973_v2, %v741_v4  ;;  %v804_v8 = vor.u32 %v958_v6, %v803_v5  ;;  %v957_v9 = vld [vmem:[%s1457_s2 + $0x74] sm:$0xf]  ;;  %v805_v10 = vld [vmem:[%s1457_s2 + $0x78] sm:$0xf0]  ;;  %v731_v11 = vld [vmem:[%s1457_s2 + $0xe0] sm:$0xf] }
   0x4   :  { %141 = vmatpush.bf16.msra.mxu0 %v740_v3  ;;  %v808_v12 = vor.u32 %v957_v9, %v805_v10  ;;  %v972_v13 = vld [vmem:[%s1457_s2 + $0xe4] sm:$0xf0]  ;;  %v971_v14 = vld [vmem:[%s1457_s2 + $0xe4] sm:$0xf]  ;;  %v733_v15 = vld [vmem:[%s1457_s2 + $0xe8] sm:$0xf0] }
   0x5   :  { %159 = vmatpush.bf16.msra.mxu1 %v744_v7  ;;  %257 = vmatpush.bf16.msra.mxu2 %v804_v8  ;;  %v732_v16 = vor.u32 %v972_v13, %v731_v11  ;;  %v736_v17 = vor.u32 %v971_v14, %v733_v15  ;;  %v795_v18 = vld [vmem:[%s1457_s2 + $0x60] sm:$0xf]  ;;  %v956_v19 = vld [vmem:[%s1457_s2 + $0x64] sm:$0xf0]  ;;  %v955_v20 = vld [vmem:[%s1457_s2 + $0x64] sm:$0xf] }
   0x6   :  { %275 = vmatpush.bf16.msra.mxu3 %v808_v12  ;;  %v796_v21 = vor.u32 %v956_v19, %v795_v18  ;;  %v797_v22 = vld [vmem:[%s1457_s2 + $0x68] sm:$0xf0]  ;;  %v723_v23 = vld [vmem:[%s1457_s2 + $0xd0] sm:$0xf]  ;;  %v970_v24 = vld [vmem:[%s1457_s2 + $0xd4] sm:$0xf0] }
   0x7   :  { %v800_v25 = vor.u32 %v955_v20, %v797_v22  ;;  %v969_v26 = vld [vmem:[%s1457_s2 + $0xd4] sm:$0xf]  ;;  %v725_v27 = vld [vmem:[%s1457_s2 + $0xd8] sm:$0xf0]  ;;  %v787_v28 = vld [vmem:[%s1457_s2 + $0x50] sm:$0xf]  ;;  %v724_v29 = vor.u32 %v970_v24, %v723_v23 }
   0x8   :  { %142 = vmatpush.bf16.msra.mxu0 %v732_v16  ;;  %v954_v30 = vld [vmem:[%s1457_s2 + $0x54] sm:$0xf0]  ;;  %v953_v31 = vld [vmem:[%s1457_s2 + $0x54] sm:$0xf]  ;;  %v789_v32 = vld [vmem:[%s1457_s2 + $0x58] sm:$0xf0]  ;;  %v728_v33 = vor.u32 %v969_v26, %v725_v27 }
   0x9   :  { %160 = vmatpush.bf16.msra.mxu1 %v736_v17  ;;  %258 = vmatpush.bf16.msra.mxu2 %v796_v21  ;;  %v788_v34 = vor.u32 %v954_v30, %v787_v28  ;;  %v715_v35 = vld [vmem:[%s1457_s2 + $0xc0] sm:$0xf]  ;;  %v968_v36 = vld [vmem:[%s1457_s2 + $0xc4] sm:$0xf0]  ;;  %v967_v37 = vld [vmem:[%s1457_s2 + $0xc4] sm:$0xf]  ;;  %v792_v38 = vor.u32 %v953_v31, %v789_v32 }
   0xa   :  { %276 = vmatpush.bf16.msra.mxu3 %v800_v25  ;;  %v717_v39 = vld [vmem:[%s1457_s2 + $0xc8] sm:$0xf0]  ;;  %v779_v40 = vld [vmem:[%s1457_s2 + $0x40] sm:$0xf]  ;;  %v952_v41 = vld [vmem:[%s1457_s2 + $0x44] sm:$0xf0]  ;;  %v716_v44 = vor.u32 %v968_v36, %v715_v35 }
   0xb   :  { %v951_v42 = vld [vmem:[%s1457_s2 + $0x44] sm:$0xf]  ;;  %v781_v43 = vld [vmem:[%s1457_s2 + $0x48] sm:$0xf0]  ;;  %v720_v45 = vor.u32 %v967_v37, %v717_v39  ;;  %v780_v46 = vor.u32 %v952_v41, %v779_v40  ;;  %v707_v47 = vld [vmem:[%s1457_s2 + $0xb0] sm:$0xf] }
   0xc   :  { %143 = vmatpush.bf16.msra.mxu0 %v724_v29  ;;  %v966_v48 = vld [vmem:[%s1457_s2 + $0xb4] sm:$0xf0]  ;;  %v965_v49 = vld [vmem:[%s1457_s2 + $0xb4] sm:$0xf]  ;;  %v784_v50 = vor.u32 %v951_v42, %v781_v43  ;;  %v709_v51 = vld [vmem:[%s1457_s2 + $0xb8] sm:$0xf0] }
   0xd   :  { %161 = vmatpush.bf16.msra.mxu1 %v728_v33  ;;  %259 = vmatpush.bf16.msra.mxu2 %v788_v34  ;;  %v771_v52 = vld [vmem:[%s1457_s2 + $0x30] sm:$0xf]  ;;  %v950_v53 = vld [vmem:[%s1457_s2 + $0x34] sm:$0xf0]  ;;  %v949_v54 = vld [vmem:[%s1457_s2 + $0x34] sm:$0xf]  ;;  %v708_v56 = vor.u32 %v966_v48, %v707_v47  ;;  %v712_v57 = vor.u32 %v965_v49, %v709_v51 }
   0xe   :  { %277 = vmatpush.bf16.msra.mxu3 %v792_v38  ;;  %v773_v55 = vld [vmem:[%s1457_s2 + $0x38] sm:$0xf0]  ;;  %v772_v58 = vor.u32 %v950_v53, %v771_v52  ;;  %v699_v59 = vld [vmem:[%s1457_s2 + $0xa0] sm:$0xf]  ;;  %v964_v60 = vld [vmem:[%s1457_s2 + $0xa4] sm:$0xf0] }
   0xf   :  { %v963_v61 = vld [vmem:[%s1457_s2 + $0xa4] sm:$0xf]  ;;  %v776_v62 = vor.u32 %v949_v54, %v773_v55  ;;  %v701_v63 = vld [vmem:[%s1457_s2 + $0xa8] sm:$0xf0]  ;;  %v763_v0 = vld [vmem:[%s1457_s2 + $0x20] sm:$0xf]  ;;  %v700_v4 = vor.u32 %v964_v60, %v699_v59 }
  0x10   :  { %144 = vmatpush.bf16.msra.mxu0 %v716_v44  ;;  %v948_v1 = vld [vmem:[%s1457_s2 + $0x24] sm:$0xf0]  ;;  %v947_v2 = vld [vmem:[%s1457_s2 + $0x24] sm:$0xf]  ;;  %v765_v3 = vld [vmem:[%s1457_s2 + $0x28] sm:$0xf0]  ;;  %v704_v5 = vor.u32 %v963_v61, %v701_v63 }
  0x11   :  { %162 = vmatpush.bf16.msra.mxu1 %v720_v45  ;;  %260 = vmatpush.bf16.msra.mxu2 %v780_v46  ;;  %v764_v6 = vor.u32 %v948_v1, %v763_v0  ;;  %v691_v7 = vld [vmem:[%s1457_s2 + $0x90] sm:$0xf]  ;;  %v962_v8 = vld [vmem:[%s1457_s2 + $0x94] sm:$0xf0]  ;;  %v961_v9 = vld [vmem:[%s1457_s2 + $0x94] sm:$0xf]  ;;  %v768_v10 = vor.u32 %v947_v2, %v765_v3 }
  0x12   :  { %278 = vmatpush.bf16.msra.mxu3 %v784_v50  ;;  %v693_v11 = vld [vmem:[%s1457_s2 + $0x98] sm:$0xf0]  ;;  %v755_v12 = vld [vmem:[%s1457_s2 + $0x10] sm:$0xf]  ;;  %v946_v13 = vld [vmem:[%s1457_s2 + $0x14] sm:$0xf0]  ;;  %v692_v16 = vor.u32 %v962_v8, %v691_v7 }
  0x13   :  { %v945_v14 = vld [vmem:[%s1457_s2 + $0x14] sm:$0xf]  ;;  %v757_v15 = vld [vmem:[%s1457_s2 + $0x18] sm:$0xf0]  ;;  %v683_v17 = vld [vmem:[%s1457_s2 + $0x80] sm:$0xf]  ;;  %v696_v19 = vor.u32 %v961_v9, %v693_v11  ;;  %v756_v20 = vor.u32 %v946_v13, %v755_v12 }
  0x14   :  { %145 = vmatpush.bf16.msra.mxu0 %v708_v56  ;;  %v960_v18 = vld [vmem:[%s1457_s2 + $0x84] sm:$0xf0]  ;;  %v959_v21 = vld [vmem:[%s1457_s2 + $0x84] sm:$0xf]  ;;  %v685_v22 = vld [vmem:[%s1457_s2 + $0x88] sm:$0xf0]  ;;  %v760_v24 = vor.u32 %v945_v14, %v757_v15 }
  0x15   :  { %163 = vmatpush.bf16.msra.mxu1 %v712_v57  ;;  %261 = vmatpush.bf16.msra.mxu2 %v772_v58  ;;  %v747_v23 = vld [vmem:[%s1457_s2] sm:$0xf]  ;;  %v944_v25 = vld [vmem:[%s1457_s2 + $0x4] sm:$0xf0]  ;;  %v943_v26 = vld [vmem:[%s1457_s2 + $0x4] sm:$0xf]  ;;  %v684_v31 = vor.u32 %v960_v18, %v683_v17  ;;  %v688_v35 = vor.u32 %v959_v21, %v685_v22 }
  0x16   :  { %279 = vmatpush.bf16.msra.mxu3 %v776_v62  ;;  %v749_v27 = vld [vmem:[%s1457_s2 + $0x8] sm:$0xf0]  ;;  %v24_v28 = vld [vmem:[%s1458_s1] sm:$0xff]  ;;  %v903_v29 = vld [vmem:[%s1459_s3 + $0x74] sm:$0xf]  ;;  %v748_v36 = vor.u32 %v944_v25, %v747_v23 }
  0x17   :  { %v998_v30 = vld [vmem:[%s1459_s3 + $0x78] sm:$0xf0]  ;;  %v25_v32 = vld [vmem:[%s1458_s1 + $0x8] sm:$0xff]  ;;  %v935_v33 = vld [vmem:[%s1459_s3 + $0xf4] sm:$0xf]  ;;  %v752_v39 = vor.u32 %v943_v26, %v749_v27 }
  0x18   :  { %146 = vmatpush.bf16.msra.mxu0 %v700_v4  ;;  %v1006_v34 = vld [vmem:[%s1459_s3 + $0xf8] sm:$0xf0]  ;;  %v19_v37 = vld [vmem:[%s1460_s0] sm:$0xff]  ;;  %v20_v38 = vld [vmem:[%s1460_s0 + $0x8] sm:$0xff]  ;;  %v904_v40 = vor.u32 %v998_v30, %v903_v29  ;;  %v27_v44 = vpack.c.bf16 %v25_v32, %v24_v28 }
  0x19   :  { %164 = vmatpush.bf16.msra.mxu1 %v704_v5  ;;  %262 = vmatpush.bf16.msra.mxu2 %v764_v6  ;;  %v839_v41 = vld [vmem:[%s1459_s3 + $0x70] sm:$0xf]  ;;  %v982_v42 = vld [vmem:[%s1459_s3 + $0x74] sm:$0xf0]  ;;  %v936_v45 = vor.u32 %v1006_v34, %v935_v33  ;;  %v899_v47 = vld [vmem:[%s1459_s3 + $0x64] sm:$0xf]  ;;  %v22_v49 = vpack.c.bf16 %v20_v38, %v19_v37 }
  0x1a   :  { %280 = vmatpush.bf16.msra.mxu3 %v768_v10  ;;  %v871_v43 = vld [vmem:[%s1459_s3 + $0xf0] sm:$0xf]  ;;  %v990_v46 = vld [vmem:[%s1459_s3 + $0xf4] sm:$0xf0]  ;;  %v997_v48 = vld [vmem:[%s1459_s3 + $0x68] sm:$0xf0]  ;;  %v840_v52 = vor.u32 %v982_v42, %v839_v41 }
  0x1b   :  { %v931_v50 = vld [vmem:[%s1459_s3 + $0xe4] sm:$0xf]  ;;  %v1005_v51 = vld [vmem:[%s1459_s3 + $0xe8] sm:$0xf0]  ;;  %v872_v53 = vor.u32 %v990_v46, %v871_v43  ;;  %v900_v54 = vor.u32 %v997_v48, %v899_v47  ;;  %v835_v55 = vld [vmem:[%s1459_s3 + $0x60] sm:$0xf] }
  0x1c   :  { %147 = vmatpush.bf16.msra.mxu0 %v692_v16  ;;  %v981_v56 = vld [vmem:[%s1459_s3 + $0x64] sm:$0xf0]  ;;  %v867_v57 = vld [vmem:[%s1459_s3 + $0xe0] sm:$0xf]  ;;  %v932_v58 = vor.u32 %v1005_v51, %v931_v50  ;;  %v895_v60 = vld [vmem:[%s1459_s3 + $0x54] sm:$0xf] }
  0x1d   :  { %165 = vmatpush.bf16.msra.mxu1 %v696_v19  ;;  %263 = vmatpush.bf16.msra.mxu2 %v756_v20  ;;  %v989_v59 = vld [vmem:[%s1459_s3 + $0xe4] sm:$0xf0]  ;;  %v996_v61 = vld [vmem:[%s1459_s3 + $0x58] sm:$0xf0]  ;;  %v927_v62 = vld [vmem:[%s1459_s3 + $0xd4] sm:$0xf]  ;;  %v836_v0 = vor.u32 %v981_v56, %v835_v55 }
  0x1e   :  { %281 = vmatpush.bf16.msra.mxu3 %v760_v24  ;;  %v1004_v63 = vld [vmem:[%s1459_s3 + $0xd8] sm:$0xf0]  ;;  %v868_v1 = vor.u32 %v989_v59, %v867_v57  ;;  %v896_v2 = vor.u32 %v996_v61, %v895_v60  ;;  %v831_v3 = vld [vmem:[%s1459_s3 + $0x50] sm:$0xf]  ;;  %v980_v4 = vld [vmem:[%s1459_s3 + $0x54] sm:$0xf0] }
  0x1f   :  { %v928_v5 = vor.u32 %v1004_v63, %v927_v62  ;;  %v863_v6 = vld [vmem:[%s1459_s3 + $0xd0] sm:$0xf]  ;;  %v988_v7 = vld [vmem:[%s1459_s3 + $0xd4] sm:$0xf0]  ;;  %v832_v8 = vor.u32 %v980_v4, %v831_v3  ;;  %v891_v14 = vld [vmem:[%s1459_s3 + $0x44] sm:$0xf] }
  0x20   :  { %148 = vmatpush.bf16.msra.mxu0 %v684_v31  ;;  %v864_v9 = vor.u32 %v988_v7, %v863_v6  ;;  %v26_v10 = vld [vmem:[%s1458_s1 + $0x10] sm:$0xff]  ;;  %v995_v15 = vld [vmem:[%s1459_s3 + $0x48] sm:$0xf0]  ;;  %v923_v16 = vld [vmem:[%s1459_s3 + $0xc4] sm:$0xf] }
  0x21   :  { %166 = vmatpush.bf16.msra.mxu1 %v688_v35  ;;  %264 = vmatpush.bf16.msra.mxu2 %v748_v36  ;;  %v21_v11 = vld [vmem:[%s1460_s0 + $0x10] sm:$0xff]  ;;  %v28_v12 = vpack.c.bf16 %v26_v10, %v26_v10  ;;  %v892_v17 = vor.u32 %v995_v15, %v891_v14  ;;  %v1003_v18 = vld [vmem:[%s1459_s3 + $0xc8] sm:$0xf0]  ;;  %v827_v19 = vld [vmem:[%s1459_s3 + $0x40] sm:$0xf] }
  0x22   :  { %282 = vmatpush.bf16.msra.mxu3 %v752_v39  ;;  %v23_v13 = vpack.c.bf16 %v21_v11, %v21_v11  ;;  %v979_v20 = vld [vmem:[%s1459_s3 + $0x44] sm:$0xf0]  ;;  %v924_v21 = vor.u32 %v1003_v18, %v923_v16  ;;  %v859_v23 = vld [vmem:[%s1459_s3 + $0xc0] sm:$0xf]  ;;  %v887_v25 = vld [vmem:[%s1459_s3 + $0x34] sm:$0xf] }
  0x23   :  { %149 = vmatmul.bf16.vlgmr.msra.gmra.mxu0 %v27_v44  ;;  %v828_v22 = vor.u32 %v979_v20, %v827_v19  ;;  %v987_v24 = vld [vmem:[%s1459_s3 + $0xc4] sm:$0xf0]  ;;  %v994_v27 = vld [vmem:[%s1459_s3 + $0x38] sm:$0xf0]  ;;  %v919_v28 = vld [vmem:[%s1459_s3 + $0xb4] sm:$0xf] }
  0x24   :  { %167 = vmatmul.bf16.vlgmr.msra.gmra.mxu1 %v27_v44  ;;  %265 = vmatmul.bf16.vlgmr.msra.gmra.mxu2 %v22_v49  ;;  %v860_v26 = vor.u32 %v987_v24, %v859_v23  ;;  %v1002_v29 = vld [vmem:[%s1459_s3 + $0xb8] sm:$0xf0]  ;;  %v888_v30 = vor.u32 %v994_v27, %v887_v25  ;;  %v823_v32 = vld [vmem:[%s1459_s3 + $0x30] sm:$0xf]  ;;  %v978_v33 = vld [vmem:[%s1459_s3 + $0x34] sm:$0xf0] }
  0x25   :  { %595 = vmatpush.bf16.msrb.mxu2 %v904_v40  ;;  %283 = vmatmul.bf16.vlgmr.msra.gmra.mxu3 %v22_v49  ;;  %v920_v31 = vor.u32 %v1002_v29, %v919_v28  ;;  %v855_v34 = vld [vmem:[%s1459_s3 + $0xb0] sm:$0xf]  ;;  %v824_v35 = vor.u32 %v978_v33, %v823_v32  ;;  %v986_v36 = vld [vmem:[%s1459_s3 + $0xb4] sm:$0xf0]  ;;  %v883_v38 = vld [vmem:[%s1459_s3 + $0x24] sm:$0xf] }
  0x26   :  { %613 = vmatpush.bf16.msrb.mxu3 %v936_v45  ;;  %431 = vmatpush.bf16.msrb.mxu0 %v840_v52  ;;  %v856_v37 = vor.u32 %v986_v36, %v855_v34  ;;  %v993_v39 = vld [vmem:[%s1459_s3 + $0x28] sm:$0xf0]  ;;  %v915_v40 = vld [vmem:[%s1459_s3 + $0xa4] sm:$0xf]  ;;  %v819_v43 = vld [vmem:[%s1459_s3 + $0x20] sm:$0xf] }
  0x27   :  { %449 = vmatpush.bf16.msrb.mxu1 %v872_v53  ;;  %v884_v41 = vor.u32 %v993_v39, %v883_v38  ;;  %v1001_v42 = vld [vmem:[%s1459_s3 + $0xa8] sm:$0xf0]  ;;  %v977_v44 = vld [vmem:[%s1459_s3 + $0x24] sm:$0xf0]  ;;  %v851_v47 = vld [vmem:[%s1459_s3 + $0xa0] sm:$0xf] }
  0x28   :  { %v916_v45 = vor.u32 %v1001_v42, %v915_v40  ;;  %v820_v46 = vor.u32 %v977_v44, %v819_v43  ;;  %v985_v48 = vld [vmem:[%s1459_s3 + $0xa4] sm:$0xf0]  ;;  %v879_v49 = vld [vmem:[%s1459_s3 + $0x14] sm:$0xf]  ;;  %v992_v51 = vld [vmem:[%s1459_s3 + $0x18] sm:$0xf0] }
  0x29   :  { %596 = vmatpush.bf16.msrb.mxu2 %v900_v54  ;;  %v852_v50 = vor.u32 %v985_v48, %v851_v47  ;;  %v911_v52 = vld [vmem:[%s1459_s3 + $0x94] sm:$0xf]  ;;  %v1000_v53 = vld [vmem:[%s1459_s3 + $0x98] sm:$0xf0]  ;;  %v880_v54 = vor.u32 %v992_v51, %v879_v49  ;;  %v815_v56 = vld [vmem:[%s1459_s3 + $0x10] sm:$0xf] }
  0x2a   :  { %614 = vmatpush.bf16.msrb.mxu3 %v932_v58  ;;  %432 = vmatpush.bf16.msrb.mxu0 %v836_v0  ;;  %v912_v55 = vor.u32 %v1000_v53, %v911_v52  ;;  %v976_v57 = vld [vmem:[%s1459_s3 + $0x14] sm:$0xf0]  ;;  %v847_v58 = vld [vmem:[%s1459_s3 + $0x90] sm:$0xf]  ;;  %v875_v62 = vld [vmem:[%s1459_s3 + $0x4] sm:$0xf] }
  0x2b   :  { %450 = vmatpush.bf16.msrb.mxu1 %v868_v1  ;;  %v816_v59 = vor.u32 %v976_v57, %v815_v56  ;;  %v984_v60 = vld [vmem:[%s1459_s3 + $0x94] sm:$0xf0]  ;;  %v991_v63 = vld [vmem:[%s1459_s3 + $0x8] sm:$0xf0]  ;;  %v907_v0 = vld [vmem:[%s1459_s3 + $0x84] sm:$0xf] }
  0x2c   :  { %v848_v61 = vor.u32 %v984_v60, %v847_v58  ;;  %v876_v1 = vor.u32 %v991_v63, %v875_v62  ;;  %v811_v3 = vld [vmem:[%s1459_s3] sm:$0xf]  ;;  %v975_v4 = vld [vmem:[%s1459_s3 + $0x4] sm:$0xf0] }
  0x2d   :  { %597 = vmatpush.bf16.msrb.mxu2 %v896_v2  ;;  %v999_v2 = vld [vmem:[%s1459_s3 + $0x88] sm:$0xf0]  ;;  %v812_v6 = vor.u32 %v975_v4, %v811_v3  ;;  %v843_v7 = vld [vmem:[%s1459_s3 + $0x80] sm:$0xf] }
  0x2e   :  { %615 = vmatpush.bf16.msrb.mxu3 %v928_v5  ;;  %433 = vmatpush.bf16.msrb.mxu0 %v832_v8  ;;  %v908_v5 = vor.u32 %v999_v2, %v907_v0  ;;  %v983_v8 = vld [vmem:[%s1459_s3 + $0x84] sm:$0xf0] }
  0x2f   :  { %451 = vmatpush.bf16.msrb.mxu1 %v864_v9  ;;  %v844_v9 = vor.u32 %v983_v8, %v843_v7 }
  0x31   :  { %598 = vmatpush.bf16.msrb.mxu2 %v892_v17 }
  0x32   :  { %616 = vmatpush.bf16.msrb.mxu3 %v924_v21  ;;  %434 = vmatpush.bf16.msrb.mxu0 %v828_v22 }
  0x33   :  { %154 = vmatmul.bf16.gmra.mxu0 %v28_v12  ;;  %452 = vmatpush.bf16.msrb.mxu1 %v860_v26 }
  0x34   :  { %270 = vmatmul.bf16.gmra.mxu2 %v23_v13  ;;  %172 = vmatmul.bf16.gmra.mxu1 %v28_v12 }
  0x35   :  { %288 = vmatmul.bf16.gmra.mxu3 %v23_v13  ;;  %599 = vmatpush.bf16.msrb.mxu2 %v888_v30 }
  0x36   :  { %617 = vmatpush.bf16.msrb.mxu3 %v920_v31  ;;  %435 = vmatpush.bf16.msrb.mxu0 %v824_v35 }
  0x37   :  { %453 = vmatpush.bf16.msrb.mxu1 %v856_v37 }
  0x39   :  { %600 = vmatpush.bf16.msrb.mxu2 %v884_v41 }
  0x3a   :  { %618 = vmatpush.bf16.msrb.mxu3 %v916_v45  ;;  %436 = vmatpush.bf16.msrb.mxu0 %v820_v46 }
  0x3b   :  { %454 = vmatpush.bf16.msrb.mxu1 %v852_v50 }
  0x3d   :  { %601 = vmatpush.bf16.msrb.mxu2 %v880_v54 }
  0x3e   :  { %619 = vmatpush.bf16.msrb.mxu3 %v912_v55  ;;  %437 = vmatpush.bf16.msrb.mxu0 %v816_v59 }
  0x3f   :  { %455 = vmatpush.bf16.msrb.mxu1 %v848_v61 }
  0x41   :  { %602 = vmatpush.bf16.msrb.mxu2 %v876_v1 }
  0x42   :  { %620 = vmatpush.bf16.msrb.mxu3 %v908_v5  ;;  %438 = vmatpush.bf16.msrb.mxu0 %v812_v6 }
  0x43   :  { %456 = vmatpush.bf16.msrb.mxu1 %v844_v9 }
  0xa0   :  { %v150_v10 = vpop.f32.mrf.mxu0 }
  0xa1   :  { %v168_v11 = vpop.f32.mrf.mxu1 }
  0xa7   :  { %v266_v12 = vpop.f32.mrf.mxu2 }
  0xa8   :  { %v284_v13 = vpop.f32.mrf.mxu3  ;;  %v152_v14 = vpop.f32.mrf.mxu0  ;;  %v267_v16 = vadd.f32 %v266_v12, %v150_v10 }
  0xa9   :  { %v170_v15 = vpop.f32.mrf.mxu1  ;;  %v285_v17 = vadd.f32 %v284_v13, %v168_v11 }
  0xaa   :  { %v293_v24 = vmax.f32 %v267_v16, 0.0 }
  0xab   :  { %v294_v26 = vmax.f32 %v285_v17, 0.0 }
  0xaf   :  { %v268_v18 = vpop.f32.mrf.mxu2 }
  0xb0   :  { %v269_v19 = vadd.f32 %v268_v18, %v152_v14  ;;  %v286_v20 = vpop.f32.mrf.mxu3  ;;  %v155_v21 = vpop.f32.mrf.mxu0 }
  0xb1   :  { %v287_v22 = vadd.f32 %v286_v20, %v170_v15  ;;  %v173_v23 = vpop.f32.mrf.mxu1 }
  0xb2   :  { %v295_v25 = vmax.f32 %v269_v19, 0.0 }
  0xb3   :  { %v296_v27 = vmax.f32 %v287_v22, 0.0 }
  0xb4   :  { %v299_v28 = vpack.c.bf16 %v295_v25, %v293_v24 }
  0xb5   :  { %v300_v29 = vpack.c.bf16 %v296_v27, %v294_v26 }
  0xb6   :  { %439 = vmatmul.bf16.vlgmr.msrb.gmra.mxu0 %v299_v28  ;;  %603 = vmatmul.bf16.vlgmr.msrb.gmra.mxu2 %v299_v28 }
  0xb7   :  { %457 = vmatmul.bf16.vlgmr.msrb.gmra.mxu1 %v300_v29  ;;  %621 = vmatmul.bf16.vlgmr.msrb.gmra.mxu3 %v300_v29  ;;  %v271_v30 = vpop.f32.mrf.mxu2 }
  0xb8   :  { %v289_v31 = vpop.f32.mrf.mxu3  ;;  %v157_v32 = vpop.f32.mrf.mxu0  ;;  %v272_v34 = vadd.f32 %v271_v30, %v155_v21 }
  0xb9   :  { %v175_v33 = vpop.f32.mrf.mxu1  ;;  %v290_v35 = vadd.f32 %v289_v31, %v173_v23 }
  0xba   :  { %v297_v36 = vmax.f32 %v272_v34, 0.0 }
  0xbb   :  { %v298_v37 = vmax.f32 %v290_v35, 0.0 }
  0xbc   :  { %v301_v40 = vpack.c.bf16 %v297_v36, %v297_v36 }
  0xbd   :  { %v302_v41 = vpack.c.bf16 %v298_v37, %v298_v37 }
  0xbf   :  { %v273_v38 = vpop.f32.mrf.mxu2 }
  0xc0   :  { %v291_v39 = vpop.f32.mrf.mxu3 }
  0xc6   :  { %444 = vmatmul.bf16.gmra.mxu0 %v301_v40  ;;  %608 = vmatmul.bf16.gmra.mxu2 %v301_v40 }
  0xc7   :  { %462 = vmatmul.bf16.gmra.mxu1 %v302_v41  ;;  %626 = vmatmul.bf16.gmra.mxu3 %v302_v41 }
 0x133   :  { %v440_v42 = vpop.f32.mrf.mxu0 }
 0x134   :  { %v458_v43 = vpop.f32.mrf.mxu1 }
 0x135   :  { %v459_v44 = vadd.f32 %v458_v43, %v440_v42 }
 0x137   :  { %v937_v45 = vadd.f32 -0.01, %v459_v44  ;;  %vm637_vm0 = vcmp.lt.f32.partialorder %v459_v44, -0.01  ;;  %v640_v46 = vadd.f32 0.01, %v459_v44 }
 0x138   :  { %vm631_vm1 = vcmp.gt.f32.partialorder %v459_v44, 0.01 }
 0x139   :  { %v604_v47 = vpop.f32.mrf.mxu2  ;;  %v643_v48 = vsel %vm637_vm0, %v640_v46, 0.0 }
 0x13a   :  { %v622_v49 = vpop.f32.mrf.mxu3  ;;  %v646_v50 = vsel %vm631_vm1, %v937_v45, %v643_v48 }
 0x13b   :  { %v623_v51 = vadd.f32 %v622_v49, %v604_v47  ;;  %v442_v52 = vpop.f32.mrf.mxu0  ;;  %649 = vst [vmem:[%s1461_s4] sm:$0xff] %v646_v50 }
 0x13c   :  { %v460_v53 = vpop.f32.mrf.mxu1 }
 0x13d   :  { %v940_v54 = vadd.f32 -0.01, %v623_v51  ;;  %vm658_vm2 = vcmp.lt.f32.partialorder %v623_v51, -0.01  ;;  %v461_v55 = vadd.f32 %v460_v53, %v442_v52  ;;  %v661_v56 = vadd.f32 0.01, %v623_v51 }
 0x13e   :  { %vm652_vm4 = vcmp.gt.f32.partialorder %v623_v51, 0.01 }
 0x13f   :  { %v938_v57 = vadd.f32 -0.01, %v461_v55  ;;  %vm638_vm3 = vcmp.lt.f32.partialorder %v461_v55, -0.01  ;;  %v664_v58 = vsel %vm658_vm2, %v661_v56, 0.0 }
 0x140   :  { %v641_v59 = vadd.f32 0.01, %v461_v55  ;;  %v667_v60 = vsel %vm652_vm4, %v940_v54, %v664_v58  ;;  %vm632_vm5 = vcmp.gt.f32.partialorder %v461_v55, 0.01 }
 0x141   :  { %v606_v61 = vpop.f32.mrf.mxu2  ;;  %670 = vst [vmem:[%s1462_s5] sm:$0xff] %v667_v60 }
 0x142   :  { %v644_v62 = vsel %vm638_vm3, %v641_v59, 0.0  ;;  %v624_v63 = vpop.f32.mrf.mxu3 }
 0x143   :  { %v647_v0 = vsel %vm632_vm5, %v938_v57, %v644_v62  ;;  %v625_v1 = vadd.f32 %v624_v63, %v606_v61  ;;  %v445_v2 = vpop.f32.mrf.mxu0 }
 0x144   :  { %650 = vst [vmem:[%s1461_s4 + $0x8] sm:$0xff] %v647_v0  ;;  %v463_v3 = vpop.f32.mrf.mxu1 }
 0x145   :  { %v941_v4 = vadd.f32 -0.01, %v625_v1  ;;  %vm659_vm6 = vcmp.lt.f32.partialorder %v625_v1, -0.01  ;;  %v464_v5 = vadd.f32 %v463_v3, %v445_v2  ;;  %v662_v6 = vadd.f32 0.01, %v625_v1 }
 0x146   :  { %vm653_vm8 = vcmp.gt.f32.partialorder %v625_v1, 0.01 }
 0x147   :  { %v939_v7 = vadd.f32 -0.01, %v464_v5  ;;  %vm639_vm7 = vcmp.lt.f32.partialorder %v464_v5, -0.01  ;;  %v665_v8 = vsel %vm659_vm6, %v662_v6, 0.0 }
 0x148   :  { %v642_v9 = vadd.f32 0.01, %v464_v5  ;;  %v668_v10 = vsel %vm653_vm8, %v941_v4, %v665_v8  ;;  %vm633_vm9 = vcmp.gt.f32.partialorder %v464_v5, 0.01 }
 0x149   :  { %v609_v11 = vpop.f32.mrf.mxu2  ;;  %671 = vst [vmem:[%s1462_s5 + $0x8] sm:$0xff] %v668_v10 }
 0x14a   :  { %v645_v12 = vsel %vm639_vm7, %v642_v9, 0.0  ;;  %v627_v13 = vpop.f32.mrf.mxu3 }
 0x14b   :  { %v648_v14 = vsel %vm633_vm9, %v939_v7, %v645_v12  ;;  %v628_v15 = vadd.f32 %v627_v13, %v609_v11  ;;  %v447_v16 = vpop.f32.mrf.mxu0 }
 0x14c   :  { %651 = vst [vmem:[%s1461_s4 + $0x10] sm:$0xff] %v648_v14  ;;  %v465_v17 = vpop.f32.mrf.mxu1 }
 0x14d   :  { %v942_v18 = vadd.f32 -0.01, %v628_v15  ;;  %vm660_vm10 = vcmp.lt.f32.partialorder %v628_v15, -0.01  ;;  %v663_v19 = vadd.f32 0.01, %v628_v15 }
 0x14e   :  { %vm654_vm11 = vcmp.gt.f32.partialorder %v628_v15, 0.01 }
 0x14f   :  { %v666_v20 = vsel %vm660_vm10, %v663_v19, 0.0 }
 0x150   :  { %v669_v21 = vsel %vm654_vm11, %v942_v18, %v666_v20 }
 0x151   :  { %v611_v22 = vpop.f32.mrf.mxu2  ;;  %672 = vst [vmem:[%s1462_s5 + $0x10] sm:$0xff] %v669_v21 }
 0x152   :  { %v629_v23 = vpop.f32.mrf.mxu3 }

// kernel: _lambda_.18
= control target key start
LH: loop header
LB: loop body
LE: loop exit
PB: predicated region body
PF: predicated region fallthrough
CT: control target
= control target key end

     0   :  { %s709_s18 = smov 0   ;;  %s711_s19 = smov 0   ;;  %s775_s0 = inlined_call_operand.vmem [shape: bf16[2,16,128], index: 0, kind: input, shape index: {}]   ;;  %s776_s1 = inlined_call_operand.vmem [shape: bf16[128,128], index: 1, kind: input, shape index: {}]   ;;  %s777_s2 = inlined_call_operand.vmem [shape: f32[1,128], index: 2, kind: input, shape index: {}]   ;;  %s778_s3 = inlined_call_operand.vmem [shape: f32[2,16,128], index: 3, kind: input, shape index: {}]   ;;  %s779_s4 = inlined_call_operand.vmem [shape: f32[2,16,128], index: 4, kind: input, shape index: {}]   ;;  %s780_s5 = inlined_call_operand.vmem [shape: bf16[2,16,128], index: 5, kind: output, shape index: {}]  }
   0x1   :  { %s713_s20 = smov 0  }
   0x2 LB: > { %s27_s21 = sadd.s32 1, %s673_s19  ;;  %p565_p0 = scmp.ge.s32.totalorder %s677_s20, 1  ;;  %s677_s20 = sphi %s713_s20, %s15_s20   ;;  %s673_s19 = sphi %s711_s19, %s782_s19   ;;  %s669_s18 = sphi %s709_s18, %s781_s18  }
   0x3   : > { %p29_p1 = scmp.ge.s32.totalorder %s27_s21, 2  ;;  %p242_p2 = scmp.lt.s32.totalorder %s677_s20, 3 }
   0x5   : > { %s784_s21 = smov (%p29_p1, %s27_s21), 0  ;;  %p243_p3 = pnand %p565_p0, %p242_p2 }
   0x6   : > { %p297_p4 = scmp.lt.s32.totalorder (!%p243_p3), %s669_s18, 1 }
   0x7   : > { %246 = sbr.rel (%p243_p3) target bundleno = 187 (0xbb), region = 40 }
   0xc   : > { %v624_v0 = vld [vmem:[%s776_s1 + $0x38] sm:$0xff]  ;;  %v623_v1 = vld [vmem:[%s776_s1 + $0x30] sm:$0xff]  ;;  %v622_v2 = vld [vmem:[%s776_s1 + $0x28] sm:$0xff]  ;;  %s786_s18 = smov (!%p297_p4, %s669_s18), 1 }
   0xd   : > { %412 = vmatpush.bf16.msra.mxu0 %v624_v0  ;;  %v621_v3 = vld [vmem:[%s776_s1 + $0x20] sm:$0xff]  ;;  %v620_v4 = vld [vmem:[%s776_s1 + $0x18] sm:$0xff]  ;;  %v619_v5 = vld [vmem:[%s776_s1 + $0x10] sm:$0xff]  ;;  %s612_s11 = sshll.u32 %s786_s18, 3  ;;  %s613_s17 = sshll.u32 %s786_s18, 4 }
   0xe   : > { %v618_v6 = vld [vmem:[%s776_s1 + $0x8] sm:$0xff]  ;;  %v617_v7 = vld [vmem:[%s776_s1] sm:$0xff]  ;;  %s304_s16 = scalar_lea.vmem %s775_s0, %s612_s11  ;;  %s314_s26 = scalar_lea.vmem %s778_s3, %s613_s17 }
   0xf   : > { %v616_v8 = vld [vmem:[%s304_s16] sm:$0xff]  ;;  %s324_s29 = scalar_lea.vmem %s779_s4, %s613_s17  ;;  %v427_v14 = vld [vmem:[%s314_s26 + $0x8] sm:$0xff]  ;;  %s334_s6 = scalar_lea.vmem %s780_s5, %s612_s11 }
  0x10   : > { %v654_v10 = vld [vmem:[%s777_s2] ss:$0 sm:$0xff]  ;;  %v431_v18 = vld [vmem:[%s324_s29 + $0x8] sm:$0xff] }
  0x11   : > { %413 = vmatpush.bf16.msra.mxu0 %v623_v1  ;;  %v426_v12 = vld [vmem:[%s314_s26] sm:$0xff] }
  0x12   : > { %v430_v17 = vld [vmem:[%s324_s29] sm:$0xff] }
  0x15   : > { %414 = vmatpush.bf16.msra.mxu0 %v622_v2 }
  0x19   : > { %415 = vmatpush.bf16.msra.mxu0 %v621_v3 }
  0x1d   : > { %416 = vmatpush.bf16.msra.mxu0 %v620_v4 }
  0x21   : > { %417 = vmatpush.bf16.msra.mxu0 %v619_v5 }
  0x25   : > { %418 = vmatpush.bf16.msra.mxu0 %v618_v6 }
  0x29   : > { %419 = vmatpush.bf16.msra.mxu0 %v617_v7 }
  0x2c   : > { %420 = vmatmul.bf16.vlgmr.msra.gmra.mxu0 %v616_v8 }
  0xa9   : > { %v421_v9 = vpop.f32.mrf.mxu0 }
  0xaa   : > { %v422_v11 = vadd.f32 %v654_v10, %v421_v9 }
  0xac   : > { %v428_v15 = vadd.f32 %v426_v12, %v422_v11 }
  0xae   : > { %v432_v20 = vadd.f32 %v430_v17, %v428_v15 }
  0xb1   : > { %v423_v13 = vpop.f32.mrf.mxu0 }
  0xb2   : > { %v424_v16 = vadd.f32 %v654_v10, %v423_v13 }
  0xb4   : > { %v429_v19 = vadd.f32 %v427_v14, %v424_v16 }
  0xb6   : > { %v433_v21 = vadd.f32 %v431_v18, %v429_v19 }
  0xb8   : > { %v628_v22 = vpack.c.bf16 %v433_v21, %v432_v20 }
  0xba   : > { %629 = vst [vmem:[%s334_s6] sm:$0xff] %v628_v22  }
  0xbb PF: > { %s15_s20 = sadd.s32 1, %s677_s20   ;;  %s781_s18 = smov %s673_s19 }
  0xbc   : > { %p12_p5 = scmp.ge.s32.totalorder %s15_s20, 4   ;;  %s782_s19 = smov %s784_s21 }
  0xbe   :  { %14 = sbr.rel (!%p12_p5) target bundleno = 2 (0x2), region = 76 }

// kernel: _lambda_.27
= control target key start
LH: loop header
LB: loop body
LE: loop exit
PB: predicated region body
PF: predicated region fallthrough
CT: control target
= control target key end

     0   :  { %s480_s9 = smov 0   ;;  %s482_s10 = smov 0   ;;  %s537_s0 = inlined_call_operand.vmem [shape: bf16[2,16,128], index: 0, kind: input, shape index: {}]   ;;  %s538_s1 = inlined_call_operand.vmem [shape: bf16[128,72], index: 1, kind: input, shape index: {}]   ;;  %s539_s2 = inlined_call_operand.vmem [shape: f32[2,16,72], index: 2, kind: output, shape index: {}]  }
   0x1   :  { %s484_s11 = smov 0  }
   0x2 LB: > { %s24_s12 = sadd.s32 1, %s459_s10  ;;  %p363_p0 = scmp.ge.s32.totalorder %s463_s11, 1  ;;  %s463_s11 = sphi %s484_s11, %s12_s11   ;;  %s459_s10 = sphi %s482_s10, %s541_s10   ;;  %s455_s9 = sphi %s480_s9, %s540_s9  }
   0x3   : > { %p26_p1 = scmp.ge.s32.totalorder %s24_s12, 2  ;;  %p133_p2 = scmp.lt.s32.totalorder %s463_s11, 3 }
   0x5   : > { %s543_s12 = smov (%p26_p1, %s24_s12), 0  ;;  %p134_p3 = pnand %p363_p0, %p133_p2 }
   0x6   : > { %p164_p4 = scmp.lt.s32.totalorder (!%p134_p3), %s455_s9, 1 }
   0x7   : > { %137 = sbr.rel (%p134_p3) target bundleno = 179 (0xb3), region = 28 }
   0xc   : > { %v416_v0 = vld [vmem:[%s538_s1 + $0x38] sm:$0xff]  ;;  %v415_v1 = vld [vmem:[%s538_s1 + $0x30] sm:$0xff]  ;;  %v414_v2 = vld [vmem:[%s538_s1 + $0x28] sm:$0xff]  ;;  %s545_s9 = smov (!%p164_p4, %s455_s9), 1  ;;  %vm269_vm0 = vcmask 588800  }
   0xd   : > { %255 = vmatpush.bf16.msra.mxu0 %v416_v0  ;;  %v413_v3 = vld [vmem:[%s538_s1 + $0x20] sm:$0xff]  ;;  %v412_v4 = vld [vmem:[%s538_s1 + $0x18] sm:$0xff]  ;;  %v411_v5 = vld [vmem:[%s538_s1 + $0x10] sm:$0xff]  ;;  %s406_s27 = sshll.u32 %s545_s9, 3  ;;  %s407_s5 = sshll.u32 %s545_s9, 4 }
   0xe   : > { %v410_v6 = vld [vmem:[%s538_s1 + $0x8] sm:$0xff]  ;;  %v409_v7 = vld [vmem:[%s538_s1] sm:$0xff]  ;;  %s171_s4 = scalar_lea.vmem %s537_s0, %s406_s27  ;;  %s181_s8 = scalar_lea.vmem %s539_s2, %s407_s5 }
   0xf   : > { %v408_v8 = vld [vmem:[%s171_s4] sm:$0xff] }
  0x11   : > { %256 = vmatpush.bf16.msra.mxu0 %v415_v1 }
  0x15   : > { %257 = vmatpush.bf16.msra.mxu0 %v414_v2 }
  0x19   : > { %258 = vmatpush.bf16.msra.mxu0 %v413_v3 }
  0x1d   : > { %259 = vmatpush.bf16.msra.mxu0 %v412_v4 }
  0x21   : > { %260 = vmatpush.bf16.msra.mxu0 %v411_v5 }
  0x25   : > { %261 = vmatpush.bf16.msra.mxu0 %v410_v6 }
  0x29   : > { %262 = vmatpush.bf16.msra.mxu0 %v409_v7 }
  0x2c   : > { %263 = vmatmul.bf16.vlgmr.msra.gmra.mxu0 %v408_v8 }
  0xa9   : > { %v264_v9 = vpop.f32.mrf.mxu0 }
  0xaa   : > { %270 = vst.msk [vmem:[%s181_s8] sm:$0xff] %vm269_vm0, %v264_v9 }
  0xb1   : > { %v266_v10 = vpop.f32.mrf.mxu0 }
  0xb2   : > { %271 = vst.msk [vmem:[%s181_s8 + $0x8] sm:$0xff] %vm269_vm0, %v266_v10 }
  0xb3 PF: > { %s12_s11 = sadd.s32 1, %s463_s11   ;;  %s540_s9 = smov %s459_s10 }
  0xb4   : > { %p9_p5 = scmp.ge.s32.totalorder %s12_s11, 4   ;;  %s541_s10 = smov %s543_s12 }
  0xb6   :  { %11 = sbr.rel (!%p9_p5) target bundleno = 2 (0x2), region = 58 }

// kernel: _lambda_.20
= control target key start
LH: loop header
LB: loop body
LE: loop exit
PB: predicated region body
PF: predicated region fallthrough
CT: control target
= control target key end

     0   :  { %s1670_s27 = smov 0   ;;  %s1672_s28 = smov 0   ;;  %s2049_s0 = inlined_call_operand.vmem [shape: bf16[2,16,128], index: 0, kind: input, shape index: {}]   ;;  %s2050_s1 = inlined_call_operand.vmem [shape: f32[2,1,128], index: 1, kind: input, shape index: {}]   ;;  %s2051_s2 = inlined_call_operand.vmem [shape: f32[2,1,128], index: 2, kind: input, shape index: {}]   ;;  %s2052_s3 = inlined_call_operand.vmem [shape: bf16[128,512], index: 3, kind: input, shape index: {}]   ;;  %s2053_s4 = inlined_call_operand.vmem [shape: f32[1,512], index: 4, kind: input, shape index: {}]   ;;  %s2054_s5 = inlined_call_operand.vmem [shape: bf16[512,128], index: 5, kind: input, shape index: {}]   ;;  %s2055_s6 = inlined_call_operand.vmem [shape: f32[1,128], index: 6, kind: input, shape index: {}]   ;;  %s2056_s7 = inlined_call_operand.vmem [shape: bf16[2,16,128], index: 7, kind: input, shape index: {}]   ;;  %s2057_s8 = inlined_call_operand.vmem [shape: bf16[2,16,128], index: 8, kind: output, shape index: {}]  }
   0x1   :  { %s1674_s29 = smov 0  }
   0x2 LB: > { %s30_s30 = sadd.s32 1, %s1619_s28  ;;  %p1213_p0 = scmp.ge.s32.totalorder %s1623_s29, 1  ;;  %s1623_s29 = sphi %s1674_s29, %s18_s29   ;;  %s1619_s28 = sphi %s1672_s28, %s2059_s28   ;;  %s1615_s27 = sphi %s1670_s27, %s2058_s27  }
   0x3   : > { %p32_p1 = scmp.ge.s32.totalorder %s30_s30, 2  ;;  %p316_p2 = scmp.lt.s32.totalorder %s1623_s29, 3 }
   0x5   : > { %s2061_s30 = smov (%p32_p1, %s30_s30), 0  ;;  %p317_p3 = pnand %p1213_p0, %p316_p2 }
   0x6   : > { %p374_p4 = scmp.lt.s32.totalorder (!%p317_p3), %s1615_s27, 1 }
   0x7   : > { %320 = sbr.rel (%p317_p3) target bundleno = 361 (0x169), region = 52 }
   0xc   : > { %v1334_v0 = vld [vmem:[%s2052_s3 + $0xe0] sm:$0xf]  ;;  %v1511_v1 = vld [vmem:[%s2052_s3 + $0xec] sm:$0xf0]  ;;  %v1509_v2 = vld [vmem:[%s2052_s3 + $0xe4] sm:$0xf] }
   0xd   : > { %v1335_v3 = vor.u32 %v1511_v1, %v1334_v0  ;;  %v1336_v4 = vld [vmem:[%s2052_s3 + $0xf0] sm:$0xf0]  ;;  %v1342_v5 = vld [vmem:[%s2052_s3 + $0xe8] sm:$0xf]  ;;  %v1512_v6 = vld [vmem:[%s2052_s3 + $0xf4] sm:$0xf0] }
   0xe   : > { %v1339_v7 = vor.u32 %v1509_v2, %v1336_v4  ;;  %v1343_v8 = vor.u32 %v1512_v6, %v1342_v5  ;;  %v1510_v9 = vld [vmem:[%s2052_s3 + $0xec] sm:$0xf]  ;;  %v1344_v10 = vld [vmem:[%s2052_s3 + $0xf8] sm:$0xf0]  ;;  %v1318_v11 = vld [vmem:[%s2052_s3 + $0xc0] sm:$0xf] }
   0xf   : > { %628 = vmatpush.bf16.msra.mxu0 %v1335_v3  ;;  %v1347_v12 = vor.u32 %v1510_v9, %v1344_v10  ;;  %v1507_v13 = vld [vmem:[%s2052_s3 + $0xcc] sm:$0xf0]  ;;  %v1505_v14 = vld [vmem:[%s2052_s3 + $0xc4] sm:$0xf]  ;;  %v1320_v15 = vld [vmem:[%s2052_s3 + $0xd0] sm:$0xf0] }
  0x10   : > { %642 = vmatpush.bf16.msra.mxu1 %v1339_v7  ;;  %656 = vmatpush.bf16.msra.mxu2 %v1343_v8  ;;  %v1319_v16 = vor.u32 %v1507_v13, %v1318_v11  ;;  %v1323_v17 = vor.u32 %v1505_v14, %v1320_v15  ;;  %v1326_v18 = vld [vmem:[%s2052_s3 + $0xc8] sm:$0xf]  ;;  %v1508_v19 = vld [vmem:[%s2052_s3 + $0xd4] sm:$0xf0]  ;;  %v1506_v20 = vld [vmem:[%s2052_s3 + $0xcc] sm:$0xf] }
  0x11   : > { %670 = vmatpush.bf16.msra.mxu3 %v1347_v12  ;;  %v1327_v21 = vor.u32 %v1508_v19, %v1326_v18  ;;  %v1328_v22 = vld [vmem:[%s2052_s3 + $0xd8] sm:$0xf0]  ;;  %v1302_v23 = vld [vmem:[%s2052_s3 + $0xa0] sm:$0xf]  ;;  %v1503_v24 = vld [vmem:[%s2052_s3 + $0xac] sm:$0xf0] }
  0x12   : > { %v1331_v25 = vor.u32 %v1506_v20, %v1328_v22  ;;  %v1501_v26 = vld [vmem:[%s2052_s3 + $0xa4] sm:$0xf]  ;;  %v1304_v27 = vld [vmem:[%s2052_s3 + $0xb0] sm:$0xf0]  ;;  %v1310_v28 = vld [vmem:[%s2052_s3 + $0xa8] sm:$0xf]  ;;  %v1303_v29 = vor.u32 %v1503_v24, %v1302_v23 }
  0x13   : > { %629 = vmatpush.bf16.msra.mxu0 %v1319_v16  ;;  %v1504_v30 = vld [vmem:[%s2052_s3 + $0xb4] sm:$0xf0]  ;;  %v1502_v31 = vld [vmem:[%s2052_s3 + $0xac] sm:$0xf]  ;;  %v1312_v32 = vld [vmem:[%s2052_s3 + $0xb8] sm:$0xf0]  ;;  %v1307_v33 = vor.u32 %v1501_v26, %v1304_v27 }
  0x14   : > { %643 = vmatpush.bf16.msra.mxu1 %v1323_v17  ;;  %657 = vmatpush.bf16.msra.mxu2 %v1327_v21  ;;  %v1311_v34 = vor.u32 %v1504_v30, %v1310_v28  ;;  %v1286_v35 = vld [vmem:[%s2052_s3 + $0x80] sm:$0xf]  ;;  %v1499_v36 = vld [vmem:[%s2052_s3 + $0x8c] sm:$0xf0]  ;;  %v1497_v37 = vld [vmem:[%s2052_s3 + $0x84] sm:$0xf]  ;;  %v1315_v38 = vor.u32 %v1502_v31, %v1312_v32 }
  0x15   : > { %671 = vmatpush.bf16.msra.mxu3 %v1331_v25  ;;  %v1288_v39 = vld [vmem:[%s2052_s3 + $0x90] sm:$0xf0]  ;;  %v1294_v40 = vld [vmem:[%s2052_s3 + $0x88] sm:$0xf]  ;;  %v1500_v41 = vld [vmem:[%s2052_s3 + $0x94] sm:$0xf0]  ;;  %v1287_v44 = vor.u32 %v1499_v36, %v1286_v35 }
  0x16   : > { %v1498_v42 = vld [vmem:[%s2052_s3 + $0x8c] sm:$0xf]  ;;  %v1296_v43 = vld [vmem:[%s2052_s3 + $0x98] sm:$0xf0]  ;;  %v1291_v45 = vor.u32 %v1497_v37, %v1288_v39  ;;  %v1295_v46 = vor.u32 %v1500_v41, %v1294_v40  ;;  %v1270_v47 = vld [vmem:[%s2052_s3 + $0x60] sm:$0xf] }
  0x17   : > { %630 = vmatpush.bf16.msra.mxu0 %v1303_v29  ;;  %v1495_v48 = vld [vmem:[%s2052_s3 + $0x6c] sm:$0xf0]  ;;  %v1493_v49 = vld [vmem:[%s2052_s3 + $0x64] sm:$0xf]  ;;  %v1299_v50 = vor.u32 %v1498_v42, %v1296_v43  ;;  %v1272_v51 = vld [vmem:[%s2052_s3 + $0x70] sm:$0xf0] }
  0x18   : > { %644 = vmatpush.bf16.msra.mxu1 %v1307_v33  ;;  %658 = vmatpush.bf16.msra.mxu2 %v1311_v34  ;;  %v1278_v52 = vld [vmem:[%s2052_s3 + $0x68] sm:$0xf]  ;;  %v1496_v53 = vld [vmem:[%s2052_s3 + $0x74] sm:$0xf0]  ;;  %v1494_v54 = vld [vmem:[%s2052_s3 + $0x6c] sm:$0xf]  ;;  %v1271_v56 = vor.u32 %v1495_v48, %v1270_v47  ;;  %v1275_v57 = vor.u32 %v1493_v49, %v1272_v51 }
  0x19   : > { %672 = vmatpush.bf16.msra.mxu3 %v1315_v38  ;;  %v1280_v55 = vld [vmem:[%s2052_s3 + $0x78] sm:$0xf0]  ;;  %v1279_v58 = vor.u32 %v1496_v53, %v1278_v52  ;;  %v1254_v59 = vld [vmem:[%s2052_s3 + $0x40] sm:$0xf]  ;;  %v1491_v60 = vld [vmem:[%s2052_s3 + $0x4c] sm:$0xf0] }
  0x1a   : > { %v1489_v61 = vld [vmem:[%s2052_s3 + $0x44] sm:$0xf]  ;;  %v1283_v62 = vor.u32 %v1494_v54, %v1280_v55  ;;  %v1256_v63 = vld [vmem:[%s2052_s3 + $0x50] sm:$0xf0]  ;;  %v1262_v0 = vld [vmem:[%s2052_s3 + $0x48] sm:$0xf]  ;;  %v1255_v4 = vor.u32 %v1491_v60, %v1254_v59 }
  0x1b   : > { %631 = vmatpush.bf16.msra.mxu0 %v1287_v44  ;;  %v1492_v1 = vld [vmem:[%s2052_s3 + $0x54] sm:$0xf0]  ;;  %v1490_v2 = vld [vmem:[%s2052_s3 + $0x4c] sm:$0xf]  ;;  %v1264_v3 = vld [vmem:[%s2052_s3 + $0x58] sm:$0xf0]  ;;  %v1259_v6 = vor.u32 %v1489_v61, %v1256_v63 }
  0x1c   : > { %645 = vmatpush.bf16.msra.mxu1 %v1291_v45  ;;  %659 = vmatpush.bf16.msra.mxu2 %v1295_v46  ;;  %v1238_v5 = vld [vmem:[%s2052_s3 + $0x20] sm:$0xf]  ;;  %v1263_v7 = vor.u32 %v1492_v1, %v1262_v0  ;;  %v1487_v8 = vld [vmem:[%s2052_s3 + $0x2c] sm:$0xf0]  ;;  %v1485_v9 = vld [vmem:[%s2052_s3 + $0x24] sm:$0xf]  ;;  %v1267_v11 = vor.u32 %v1490_v2, %v1264_v3 }
  0x1d   : > { %673 = vmatpush.bf16.msra.mxu3 %v1299_v50  ;;  %v1240_v10 = vld [vmem:[%s2052_s3 + $0x30] sm:$0xf0]  ;;  %v1246_v12 = vld [vmem:[%s2052_s3 + $0x28] sm:$0xf]  ;;  %v1488_v13 = vld [vmem:[%s2052_s3 + $0x34] sm:$0xf0]  ;;  %v1239_v16 = vor.u32 %v1487_v8, %v1238_v5 }
  0x1e   : > { %v1486_v14 = vld [vmem:[%s2052_s3 + $0x2c] sm:$0xf]  ;;  %v1248_v15 = vld [vmem:[%s2052_s3 + $0x38] sm:$0xf0]  ;;  %v1222_v17 = vld [vmem:[%s2052_s3] sm:$0xf]  ;;  %v1243_v19 = vor.u32 %v1485_v9, %v1240_v10  ;;  %v1247_v20 = vor.u32 %v1488_v13, %v1246_v12 }
  0x1f   : > { %632 = vmatpush.bf16.msra.mxu0 %v1271_v56  ;;  %v1483_v18 = vld [vmem:[%s2052_s3 + $0xc] sm:$0xf0]  ;;  %s2063_s27 = smov (!%p374_p4, %s1615_s27), 1  ;;  %v1481_v21 = vld [vmem:[%s2052_s3 + $0x4] sm:$0xf]  ;;  %v1251_v24 = vor.u32 %v1486_v14, %v1248_v15  ;;  %v1520_v42 = vld [vmem:[%s2054_s5 + $0x38] sm:$0xff] }
  0x20   : > { %646 = vmatpush.bf16.msra.mxu1 %v1275_v57  ;;  %660 = vmatpush.bf16.msra.mxu2 %v1279_v58  ;;  %v1224_v22 = vld [vmem:[%s2052_s3 + $0x10] sm:$0xf0]  ;;  %v1230_v23 = vld [vmem:[%s2052_s3 + $0x8] sm:$0xf]  ;;  %v1484_v25 = vld [vmem:[%s2052_s3 + $0x14] sm:$0xf0]  ;;  %s385_s12 = scalar_lea.vmem %s2050_s1, %s2063_s27  ;;  %s388_s20 = scalar_lea.vmem %s2051_s2, %s2063_s27  ;;  %v1223_v29 = vor.u32 %v1483_v18, %v1222_v17 }
  0x21   : > { %674 = vmatpush.bf16.msra.mxu3 %v1283_v62  ;;  %v1482_v26 = vld [vmem:[%s2052_s3 + $0xc] sm:$0xf]  ;;  %s1881_s9 = sshll.u32 %s2063_s27, 3  ;;  %v1232_v27 = vld [vmem:[%s2052_s3 + $0x18] sm:$0xf0]  ;;  %v1227_v31 = vor.u32 %v1481_v21, %v1224_v22  ;;  %v1231_v32 = vor.u32 %v1484_v25, %v1230_v23  ;;  %v1519_v44 = vld [vmem:[%s2054_s5 + $0x30] sm:$0xff] }
  0x22   : > { %s381_s17 = scalar_lea.vmem %s2049_s0, %s1881_s9  ;;  %v1582_v28 = vld [vmem:[%s385_s12] ss:$0 sm:$0xff]  ;;  %v1235_v36 = vor.u32 %v1482_v26, %v1232_v27  ;;  %v1528_v43 = vld [vmem:[%s2054_s5 + $0x78] sm:$0xff]  ;;  %v1527_v45 = vld [vmem:[%s2054_s5 + $0x70] sm:$0xff]  ;;  %s397_s19 = scalar_lea.vmem %s2056_s7, %s1881_s9 }
  0x23   : > { %633 = vmatpush.bf16.msra.mxu0 %v1255_v4  ;;  %v1546_v30 = vld [vmem:[%s381_s17] sm:$0xff]   ;;  %v1536_v46 = vld [vmem:[%s2054_s5 + $0xb8] sm:$0xff]  ;;  %v1518_v48 = vld [vmem:[%s2054_s5 + $0x28] sm:$0xff]  ;;  %s407_s21 = scalar_lea.vmem %s2057_s8, %s1881_s9 }
  0x24   : > { %647 = vmatpush.bf16.msra.mxu1 %v1259_v6  ;;  %661 = vmatpush.bf16.msra.mxu2 %v1263_v7  ;;  %v1547_v33 = vunpack.c.l.bf16 %v1546_v30  ;;  %v1548_v34 = vunpack.c.h.bf16 %v1546_v30  ;;  %v1583_v35 = vld [vmem:[%s388_s20] ss:$0 sm:$0xff]  ;;  %v1544_v47 = vld [vmem:[%s2054_s5 + $0xf8] sm:$0xff]  ;;  %v1526_v49 = vld [vmem:[%s2054_s5 + $0x68] sm:$0xff] }
  0x25   : > { %675 = vmatpush.bf16.msra.mxu3 %v1267_v11  ;;  %v1535_v50 = vld [vmem:[%s2054_s5 + $0xb0] sm:$0xff]  ;;  %v1517_v52 = vld [vmem:[%s2054_s5 + $0x20] sm:$0xff]  ;;  %v1534_v54 = vld [vmem:[%s2054_s5 + $0xa8] sm:$0xff] }
  0x26   : > { %v417_v37 = vmul.f32 %v1582_v28, %v1547_v33  ;;  %v418_v38 = vmul.f32 %v1582_v28, %v1548_v34  ;;  %v1543_v51 = vld [vmem:[%s2054_s5 + $0xf0] sm:$0xff]  ;;  %v1525_v53 = vld [vmem:[%s2054_s5 + $0x60] sm:$0xff]  ;;  %v1542_v55 = vld [vmem:[%s2054_s5 + $0xe8] sm:$0xff] }
  0x27   : > { %634 = vmatpush.bf16.msra.mxu0 %v1239_v16  ;;  %v1516_v56 = vld [vmem:[%s2054_s5 + $0x18] sm:$0xff]  ;;  %v1533_v58 = vld [vmem:[%s2054_s5 + $0xa0] sm:$0xff]  ;;  %v1515_v60 = vld [vmem:[%s2054_s5 + $0x10] sm:$0xff] }
  0x28   : > { %648 = vmatpush.bf16.msra.mxu1 %v1243_v19  ;;  %662 = vmatpush.bf16.msra.mxu2 %v1247_v20  ;;  %v423_v39 = vadd.f32 %v1583_v35, %v417_v37  ;;  %v424_v40 = vadd.f32 %v1583_v35, %v418_v38  ;;  %v1524_v57 = vld [vmem:[%s2054_s5 + $0x58] sm:$0xff]  ;;  %v1541_v59 = vld [vmem:[%s2054_s5 + $0xe0] sm:$0xff]  ;;  %v1523_v61 = vld [vmem:[%s2054_s5 + $0x50] sm:$0xff] }
  0x29   : > { %676 = vmatpush.bf16.msra.mxu3 %v1251_v24  ;;  %v1532_v62 = vld [vmem:[%s2054_s5 + $0x98] sm:$0xff]  ;;  %v1514_v0 = vld [vmem:[%s2054_s5 + $0x8] sm:$0xff]  ;;  %v1971_v2 = vld [vmem:[%s2053_s4] sm:$0xf] }
  0x2a   : > { %v425_v41 = vpack.c.bf16 %v424_v40, %v423_v39  ;;  %v1540_v63 = vld [vmem:[%s2054_s5 + $0xd8] sm:$0xff]  ;;  %v1522_v1 = vld [vmem:[%s2054_s5 + $0x48] sm:$0xff]  ;;  %v1531_v3 = vld [vmem:[%s2054_s5 + $0x90] sm:$0xff]  ;;  %v460_v7 = vperm.slane %v1971_v2, 0  ;;  %v461_v8 = vperm.slane %v1971_v2, 1  ;;  %v462_v17 = vperm.slane %v1971_v2, 2 }
  0x2b   : > { %635 = vmatpush.bf16.msra.mxu0 %v1223_v29  ;;  %v1539_v4 = vld [vmem:[%s2054_s5 + $0xd0] sm:$0xff]  ;;  %v1513_v5 = vld [vmem:[%s2054_s5] sm:$0xff]  ;;  %v1530_v9 = vld [vmem:[%s2054_s5 + $0x88] sm:$0xff]  ;;  %v463_v18 = vperm.slane %v1971_v2, 3 }
  0x2c   : > { %649 = vmatpush.bf16.msra.mxu1 %v1227_v31  ;;  %663 = vmatpush.bf16.msra.mxu2 %v1231_v32  ;;  %v1521_v6 = vld [vmem:[%s2054_s5 + $0x40] sm:$0xff]  ;;  %v1538_v10 = vld [vmem:[%s2054_s5 + $0xc8] sm:$0xff] }
  0x2d   : > { %677 = vmatpush.bf16.msra.mxu3 %v1235_v36  ;;  %v1529_v19 = vld [vmem:[%s2054_s5 + $0x80] sm:$0xff] }
  0x2e   : > { %636 = vmatmul.bf16.vlgmr.msra.gmra.mxu0 %v425_v41  ;;  %v1537_v20 = vld [vmem:[%s2054_s5 + $0xc0] sm:$0xff] }
  0x2f   : > { %650 = vmatmul.bf16.vlgmr.msra.gmra.mxu1 %v425_v41  ;;  %664 = vmatmul.bf16.vlgmr.msra.gmra.mxu2 %v425_v41 }
  0x30   : > { %678 = vmatmul.bf16.vlgmr.msra.gmra.mxu3 %v425_v41  ;;  %1020 = vmatpush.bf16.msrb.mxu0 %v1520_v42 }
  0x31   : > { %1034 = vmatpush.bf16.msrb.mxu1 %v1528_v43  ;;  %1048 = vmatpush.bf16.msrb.mxu2 %v1536_v46 }
  0x32   : > { %1062 = vmatpush.bf16.msrb.mxu3 %v1544_v47 }
  0x34   : > { %1021 = vmatpush.bf16.msrb.mxu0 %v1519_v44 }
  0x35   : > { %1035 = vmatpush.bf16.msrb.mxu1 %v1527_v45  ;;  %1049 = vmatpush.bf16.msrb.mxu2 %v1535_v50 }
  0x36   : > { %1063 = vmatpush.bf16.msrb.mxu3 %v1543_v51 }
  0x38   : > { %1022 = vmatpush.bf16.msrb.mxu0 %v1518_v48 }
  0x39   : > { %1036 = vmatpush.bf16.msrb.mxu1 %v1526_v49  ;;  %1050 = vmatpush.bf16.msrb.mxu2 %v1534_v54 }
  0x3a   : > { %1064 = vmatpush.bf16.msrb.mxu3 %v1542_v55 }
  0x3c   : > { %1023 = vmatpush.bf16.msrb.mxu0 %v1517_v52 }
  0x3d   : > { %1037 = vmatpush.bf16.msrb.mxu1 %v1525_v53  ;;  %1051 = vmatpush.bf16.msrb.mxu2 %v1533_v58 }
  0x3e   : > { %1065 = vmatpush.bf16.msrb.mxu3 %v1541_v59 }
  0x40   : > { %1024 = vmatpush.bf16.msrb.mxu0 %v1516_v56 }
  0x41   : > { %1038 = vmatpush.bf16.msrb.mxu1 %v1524_v57  ;;  %1052 = vmatpush.bf16.msrb.mxu2 %v1532_v62 }
  0x42   : > { %1066 = vmatpush.bf16.msrb.mxu3 %v1540_v63 }
  0x44   : > { %1025 = vmatpush.bf16.msrb.mxu0 %v1515_v60 }
  0x45   : > { %1039 = vmatpush.bf16.msrb.mxu1 %v1523_v61  ;;  %1053 = vmatpush.bf16.msrb.mxu2 %v1531_v3 }
  0x46   : > { %1067 = vmatpush.bf16.msrb.mxu3 %v1539_v4 }
  0x48   : > { %1026 = vmatpush.bf16.msrb.mxu0 %v1514_v0 }
  0x49   : > { %1040 = vmatpush.bf16.msrb.mxu1 %v1522_v1  ;;  %1054 = vmatpush.bf16.msrb.mxu2 %v1530_v9 }
  0x4a   : > { %1068 = vmatpush.bf16.msrb.mxu3 %v1538_v10 }
  0x4c   : > { %1027 = vmatpush.bf16.msrb.mxu0 %v1513_v5 }
  0x4d   : > { %1041 = vmatpush.bf16.msrb.mxu1 %v1521_v6  ;;  %1055 = vmatpush.bf16.msrb.mxu2 %v1529_v19 }
  0x4e   : > { %1069 = vmatpush.bf16.msrb.mxu3 %v1537_v20 }
  0xab   : > { %v637_v11 = vpop.f32.mrf.mxu0 }
  0xac   : > { %v651_v12 = vpop.f32.mrf.mxu1  ;;  %v1993_v13 = vadd.f32 %v637_v11, %v460_v7 }
  0xad   : > { %v1995_v14 = vadd.f32 %v651_v12, %v461_v8 }
  0xae   : > { %v692_v15 = vmul.f32 0.044715, %v1993_v13 }
  0xaf   : > { %v693_v16 = vmul.f32 0.044715, %v1995_v14 }
  0xb0   : > { %v700_v21 = vmul.f32 %v692_v15, %v1993_v13  ;;  %v684_v15 = vmul.f32 0.5, %v1993_v13 }
  0xb1   : > { %v701_v22 = vmul.f32 %v693_v16, %v1995_v14 }
  0xb2   : > { %v665_v23 = vpop.f32.mrf.mxu2  ;;  %v708_v25 = vmul.f32 %v700_v21, %v1993_v13 }
  0xb3   : > { %v679_v24 = vpop.f32.mrf.mxu3  ;;  %v709_v26 = vmul.f32 %v701_v22, %v1995_v14  ;;  %v2011_v27 = vadd.f32 %v665_v23, %v462_v17  ;;  %v639_v29 = vpop.f32.mrf.mxu0 }
  0xb4   : > { %v2013_v28 = vadd.f32 %v679_v24, %v463_v18  ;;  %v653_v30 = vpop.f32.mrf.mxu1  ;;  %v640_v31 = vadd.f32 %v639_v29, %v460_v7  ;;  %v716_v33 = vadd.f32 %v708_v25, %v1993_v13 }
  0xb5   : > { %v654_v32 = vadd.f32 %v653_v30, %v461_v8  ;;  %v694_v34 = vmul.f32 0.044715, %v2011_v27  ;;  %v717_v36 = vadd.f32 %v709_v26, %v1995_v14 }
  0xb6   : > { %v695_v35 = vmul.f32 0.044715, %v2013_v28  ;;  %v696_v37 = vmul.f32 0.044715, %v640_v31  ;;  %v724_v43 = vmul.f32 0.7978846, %v716_v33 }
  0xb7   : > { %v697_v38 = vmul.f32 0.044715, %v654_v32  ;;  %v702_v39 = vmul.f32 %v694_v34, %v2011_v27  ;;  %v725_v44 = vmul.f32 0.7978846, %v717_v36  ;;  %v688_v16 = vmul.f32 0.5, %v640_v31 }
  0xb8   : > { %v703_v40 = vmul.f32 %v695_v35, %v2013_v28  ;;  %v704_v41 = vmul.f32 %v696_v37, %v640_v31  ;;  %1585 = vtanh.f32 %v724_v43  ;;  %v689_v19 = vmul.f32 0.5, %v654_v32 }
  0xb9   : > { %v705_v42 = vmul.f32 %v697_v38, %v654_v32  ;;  %v710_v45 = vmul.f32 %v702_v39, %v2011_v27  ;;  %1587 = vtanh.f32 %v725_v44  ;;  %v686_v35 = vmul.f32 0.5, %v2011_v27 }
  0xba   : > { %v711_v46 = vmul.f32 %v703_v40, %v2013_v28  ;;  %v667_v47 = vpop.f32.mrf.mxu2  ;;  %v712_v49 = vmul.f32 %v704_v41, %v640_v31  ;;  %v687_v36 = vmul.f32 0.5, %v2013_v28 }
  0xbb   : > { %v681_v48 = vpop.f32.mrf.mxu3  ;;  %v713_v50 = vmul.f32 %v705_v42, %v654_v32  ;;  %v668_v51 = vadd.f32 %v667_v47, %v462_v17  ;;  %v718_v53 = vadd.f32 %v710_v45, %v2011_v27  ;;  %v1584_v27 = vld [vmem:[%s2055_s6] ss:$0 sm:$0xff] }
  0xbc   : > { %v682_v52 = vadd.f32 %v681_v48, %v463_v18  ;;  %v720_v54 = vadd.f32 %v712_v49, %v640_v31  ;;  %v719_v56 = vadd.f32 %v711_v46, %v2013_v28  ;;  %v685_v18 = vmul.f32 0.5, %v1995_v14 }
  0xbd   : > { %v721_v55 = vadd.f32 %v713_v50, %v654_v32  ;;  %v698_v57 = vmul.f32 0.044715, %v668_v51  ;;  %v726_v63 = vmul.f32 0.7978846, %v718_v53  ;;  %v690_v14 = vmul.f32 0.5, %v668_v51 }
  0xbe   : > { %v699_v58 = vmul.f32 0.044715, %v682_v52  ;;  %v728_v59 = vmul.f32 0.7978846, %v720_v54  ;;  %v727_v0 = vmul.f32 0.7978846, %v719_v56  ;;  %v1586_v3 = vpop.eup %1585 }
  0xbf   : > { %v729_v60 = vmul.f32 0.7978846, %v721_v55  ;;  %v706_v61 = vmul.f32 %v698_v57, %v668_v51  ;;  %v1588_v4 = vpop.eup %1587  ;;  %v740_v7 = vadd.f32 1.0, %v1586_v3  ;;  %v691_v37 = vmul.f32 0.5, %v682_v52  ;;  %v1550_v54 = vld [vmem:[%s397_s19] sm:$0xff]  }
  0xc0   : > { %v707_v62 = vmul.f32 %v699_v58, %v682_v52  ;;  %1589 = vtanh.f32 %v728_v59  ;;  %v741_v11 = vadd.f32 1.0, %v1588_v4  ;;  %v1551_v58 = vunpack.c.l.bf16 %v1550_v54 }
  0xc1   : > { %1591 = vtanh.f32 %v729_v60  ;;  %v714_v1 = vmul.f32 %v706_v61, %v668_v51  ;;  %v748_v22 = vmul.f32 %v740_v7, %v684_v15  ;;  %v1552_v60 = vunpack.c.h.bf16 %v1550_v54 }
  0xc2   : > { %v715_v2 = vmul.f32 %v707_v62, %v682_v52  ;;  %1593 = vtanh.f32 %v726_v63  ;;  %v749_v25 = vmul.f32 %v741_v11, %v685_v18 }
  0xc3   : > { %v722_v5 = vadd.f32 %v714_v1, %v668_v51  ;;  %1595 = vtanh.f32 %v727_v0 }
  0xc4   : > { %v723_v6 = vadd.f32 %v715_v2, %v682_v52 }
  0xc5   : > { %v730_v8 = vmul.f32 0.7978846, %v722_v5 }
  0xc6   : > { %v731_v9 = vmul.f32 0.7978846, %v723_v6  ;;  %v1590_v10 = vpop.eup %1589 }
  0xc7   : > { %v1592_v12 = vpop.eup %1591  ;;  %v744_v17 = vadd.f32 1.0, %v1590_v10  ;;  %1597 = vtanh.f32 %v730_v8 }
  0xc8   : > { %v745_v20 = vadd.f32 1.0, %v1592_v12  ;;  %1599 = vtanh.f32 %v731_v9  ;;  %v1594_v21 = vpop.eup %1593 }
  0xc9   : > { %v752_v23 = vmul.f32 %v744_v17, %v688_v16  ;;  %v1596_v24 = vpop.eup %1595  ;;  %v742_v33 = vadd.f32 1.0, %v1594_v21 }
  0xca   : > { %v753_v26 = vmul.f32 %v745_v20, %v689_v19  ;;  %v743_v13 = vadd.f32 1.0, %v1596_v24 }
  0xcb   : > { %v756_v29 = vpack.c.bf16 %v752_v23, %v748_v22  ;;  %v750_v39 = vmul.f32 %v742_v33, %v686_v35 }
  0xcc   : > { %v757_v30 = vpack.c.bf16 %v753_v26, %v749_v25  ;;  %v751_v41 = vmul.f32 %v743_v13, %v687_v36 }
  0xcd   : > { %v1598_v34 = vpop.eup %1597  ;;  %1028 = vmatmul.bf16.vlgmr.msrb.gmra.mxu0 %v756_v29 }
  0xce   : > { %v1600_v31 = vpop.eup %1599  ;;  %1042 = vmatmul.bf16.vlgmr.msrb.gmra.mxu1 %v757_v30  ;;  %v746_v32 = vadd.f32 1.0, %v1598_v34 }
  0xcf   : > { %v747_v38 = vadd.f32 1.0, %v1600_v31 }
  0xd0   : > { %v754_v40 = vmul.f32 %v746_v32, %v690_v14 }
  0xd1   : > { %v755_v42 = vmul.f32 %v747_v38, %v691_v37 }
  0xd2   : > { %v758_v43 = vpack.c.bf16 %v754_v40, %v750_v39 }
  0xd3   : > { %v759_v44 = vpack.c.bf16 %v755_v42, %v751_v41 }
  0xd4   : > { %1056 = vmatmul.bf16.vlgmr.msrb.gmra.mxu2 %v758_v43 }
  0xd5   : > { %1070 = vmatmul.bf16.vlgmr.msrb.gmra.mxu3 %v759_v44 }
 0x14a   : > { %v1029_v45 = vpop.f32.mrf.mxu0 }
 0x14b   : > { %v1043_v46 = vpop.f32.mrf.mxu1  ;;  %v1030_v47 = vadd.f32 %v1584_v27, %v1029_v45 }
 0x14d   : > { %v1044_v50 = vadd.f32 %v1043_v46, %v1030_v47 }
 0x152   : > { %v1031_v48 = vpop.f32.mrf.mxu0 }
 0x153   : > { %v1032_v51 = vadd.f32 %v1584_v27, %v1031_v48  ;;  %v1045_v53 = vpop.f32.mrf.mxu1 }
 0x155   : > { %v1046_v55 = vadd.f32 %v1045_v53, %v1032_v51 }
 0x157   : > { %v1057_v28 = vpop.f32.mrf.mxu2 }
 0x158   : > { %v1071_v49 = vpop.f32.mrf.mxu3  ;;  %v1058_v52 = vadd.f32 %v1057_v28, %v1044_v50 }
 0x15a   : > { %v1072_v57 = vadd.f32 %v1071_v49, %v1058_v52 }
 0x15c   : > { %v1080_v63 = vadd.f32 %v1551_v58, %v1072_v57 }
 0x15f   : > { %v1059_v56 = vpop.f32.mrf.mxu2 }
 0x160   : > { %v1060_v59 = vadd.f32 %v1059_v56, %v1046_v55  ;;  %v1073_v61 = vpop.f32.mrf.mxu3 }
 0x162   : > { %v1074_v62 = vadd.f32 %v1073_v61, %v1060_v59 }
 0x164   : > { %v1081_v0 = vadd.f32 %v1552_v60, %v1074_v62 }
 0x166   : > { %v1556_v1 = vpack.c.bf16 %v1081_v0, %v1080_v63 }
 0x168   : > { %1557 = vst [vmem:[%s407_s21] sm:$0xff] %v1556_v1  }
 0x169 PF: > { %s18_s29 = sadd.s32 1, %s1623_s29   ;;  %s2058_s27 = smov %s1619_s28 }
 0x16a   : > { %p15_p5 = scmp.ge.s32.totalorder %s18_s29, 4   ;;  %s2059_s28 = smov %s2061_s30 }
 0x16c   :  { %17 = sbr.rel (!%p15_p5) target bundleno = 2 (0x2), region = 91 }

</bundles_post_ra>
